<compile_context>
chip_gen: v7x
topology: tpu7x:2x2x1
jax: 0.10.0
libtpu: 0.0.40
codegen_flags: <defaults>
</compile_context>

<pallas_src>
import functools

import jax
import jax.numpy as jnp
from jax.experimental import pallas as pl
from jax.experimental.pallas import tpu as pltpu


def _pair(v):
    return (v, v) if isinstance(v, int) else tuple(v)


def _quadruple(v):
    return (v, v, v, v) if isinstance(v, int) else tuple(v)


def _round_up(a, b):
    return ((a + b - 1) // b) * b


def _same_padding(h, w, k, stride):
    # mirrors AvgPool2d._padding for same=True
    if h % stride[0] == 0:
        ph = max(k[0] - stride[0], 0)
    else:
        ph = max(k[0] - h % stride[0], 0)
    if w % stride[1] == 0:
        pw = max(k[1] - stride[1], 0)
    else:
        pw = max(k[1] - w % stride[1], 0)
    p_l = pw // 2
    p_r = pw - p_l
    p_t = ph // 2
    p_b = ph - p_t
    return (p_l, p_r, p_t, p_b)


# --------------------------------------------------------------------------- #
# Kernel
# --------------------------------------------------------------------------- #
def _reflect_sliding_sum(src_ref, dst_ref, *, axis, k, pad_lo):
    """dst_ref (f32) <- reflect-padded, stride-1 sliding-window sum of src_ref
    along `axis`.

    Unrolled at trace time: each of the k window offsets contributes one large
    slice-add (a same-axis shift of the *unpadded* source) plus at most a couple
    of single-row/column reflected boundary fix-up adds.  No padded copy of the
    source is ever materialized; accumulation happens in float32 in dst_ref.
    """
    n_in = src_ref.shape[axis]
    n_out = dst_ref.shape[axis]
    ndim = len(dst_ref.shape)

    def _idx(lo, hi):  # inclusive slice along `axis`, full everywhere else
        idx = [slice(None)] * ndim
        idx[axis] = slice(lo, hi + 1)
        return tuple(idx)

    def _src(lo, hi):  # deferred upcast: cast per accumulated slice
        return src_ref[_idx(lo, hi)].astype(jnp.float32)

    # A window offset whose source is fully in range for every output position
    # exists whenever pad_lo + pad_hi <= k - 1 (always true for the stride-1
    # "same" padding this module uses); use it to initialize the accumulator and
    # skip a zero-fill pass.
    full = [d for d in range(k)
            if d - pad_lo >= 0 and (n_out - 1) + d - pad_lo <= n_in - 1]
    order = list(range(k))
    if full:
        order.remove(full[0])
        order.insert(0, full[0])
    else:
        dst_ref[...] = jnp.zeros_like(dst_ref)

    first = bool(full)
    for d in order:
        off = d - pad_lo
        lo = max(0, -off)
        hi = min(n_out - 1, (n_in - 1) - off)
        if lo <= hi:
            if first:
                dst_ref[...] = _src(lo + off, hi + off)
                first = False
            else:
                dst_ref[_idx(lo, hi)] += _src(lo + off, hi + off)
        # Reflected boundary positions: at most pad_lo + pad_hi tiny adds per axis.
        for o in list(range(0, lo)) + list(range(hi + 1, n_out)):
            j = o + off
            j = -j if j < 0 else 2 * (n_in - 1) - j
            dst_ref[_idx(o, o)] += _src(j, j)


def _avgpool_kernel(x_ref, o_ref, rw_ref, acc_ref, *, kh, kw, p_t, p_l, inv_area):
    """x_ref: (H, W, Cb) in the source dtype.   o_ref: (Ho, Wo, Cb).
    rw_ref: (H, Wo, Cb) f32 scratch.            acc_ref: (Ho, Wo, Cb) f32 scratch.
    Layout is channels-last, so the lane axis (Cb) is never shifted."""
    # Pass 1: sliding sum along W (sublane axis) of the raw input.
    _reflect_sliding_sum(x_ref, rw_ref, axis=1, k=kw, pad_lo=p_l)
    # Pass 2: sliding sum along H (leading axis) of the row sums.
    _reflect_sliding_sum(rw_ref, acc_ref, axis=0, k=kh, pad_lo=p_t)
    o_ref[...] = (acc_ref[...] * inv_area).astype(o_ref.dtype)


# --------------------------------------------------------------------------- #
# Wrapper / tiling policy
# --------------------------------------------------------------------------- #
def _vmem_capacity_bytes():
    # Conservative fallback (safe on every generation) if the query fails.
    cap = 64 * 1024 * 1024
    try:
        info = pltpu.get_tpu_info()
        cap = int(getattr(info, "vmem_capacity_bytes", cap) or cap)
    except Exception:
        pass
    return cap


def _choose_channel_block(nc, h, w, ho, wo, in_isz, out_isz, budget, multi_tc):
    """Channels per grid step (lane-dim block): a multiple of 128 or the full extent."""
    per_ch = (2 * h * w * in_isz        # input block, double-buffered
              + 2 * ho * wo * out_isz   # output block, double-buffered
              + 4 * h * wo              # f32 W-pass scratch
              + 4 * ho * wo             # f32 H-pass accumulator
              + 2 * h * w * in_isz)     # slack for in-kernel value temporaries
    cb = max(1, budget // per_ch)
    if nc <= 128:
        # TODO(synk): if a single (H, W, nc) block ever exceeds the budget (very
        # large planes), tile H with a (kh-1)-row halo instead of shrinking the
        # lane dim below 128.
        return nc
    if multi_tc:
        # Keep >= 4 grid steps (>= 2 per TensorCore) when the channel count allows,
        # so both v7x cores get work and the pipeline still has a step to prefetch.
        cb = min(cb, max(128, _round_up(-(-nc // 4), 128)))
    if cb >= nc:
        return nc                          # full extent is always a legal lane block
    return max(128, (cb // 128) * 128)     # lane-dense multiple of 128


def _avg_pool2d_xla(x, k, s, pads, ho, wo):
    """Pure-XLA path (used for stride>1 and as the test reference)."""
    p_l, p_r, p_t, p_b = pads
    xp = jnp.pad(x, ((0, 0), (0, 0), (p_t, p_b), (p_l, p_r)), mode="reflect")
    acc = jnp.zeros(x.shape[:2] + (ho, wo), jnp.float32)
    for di in range(k[0]):
        for dj in range(k[1]):
            acc = acc + xp[:, :, di: di + (ho - 1) * s[0] + 1: s[0],
                              dj: dj + (wo - 1) * s[1] + 1: s[1]].astype(jnp.float32)
    return (acc / float(k[0] * k[1])).astype(x.dtype)


def avg_pool2d(x, kernel_size=3, stride=1, padding=0, same=True):
    """x: (N, C, H, W). Reflect-padded average pooling matching the PyTorch module."""
    k = _pair(kernel_size)
    s = _pair(stride)
    n, c, h, w = x.shape
    if same:
        p_l, p_r, p_t, p_b = _same_padding(h, w, k, s)
    else:
        # The original module applies reflect padding even when same=False.
        p_l, p_r, p_t, p_b = _quadruple(padding)

    # PyTorch's reflect pad requires pad < dim on each side; error instead of
    # silently wrapping via negative indices.
    if max(p_l, p_r) >= w or max(p_t, p_b) >= h:
        raise ValueError(
            f"reflect padding ({p_l},{p_r},{p_t},{p_b}) must be smaller than the "
            f"input spatial dims ({h},{w})")

    hp, wp = h + p_t + p_b, w + p_l + p_r
    ho = (hp - k[0]) // s[0] + 1
    wo = (wp - k[1]) // s[1] + 1

    if s != (1, 1):
        # TODO(synk): fold stride>1 into the output BlockSpec / a strided store
        # instead of in-kernel lane-strided slices; until then use the pure-XLA
        # path (the module's default and primary use, median/box filter, is stride=1).
        return _avg_pool2d_xla(x, k, s, (p_l, p_r, p_t, p_b), ho, wo)

    nc = n * c
    # Lane-dense channels-last layout: (H, W, N*C).
    x_cl = jnp.transpose(x, (2, 3, 0, 1)).reshape(h, w, nc)

    vmem_cap = _vmem_capacity_bytes()
    multi_tc = vmem_cap <= 64 * 1024 * 1024          # v7x-like: 2 TCs, 64 MiB VMEM
    vmem_limit = min((vmem_cap * 3) // 4, 100 * 1024 * 1024)   # 96 MiB v5e/v6e, 48 MiB v7x
    cb = _choose_channel_block(
        nc, h, w, ho, wo, x.dtype.itemsize, x.dtype.itemsize,
        (vmem_limit * 3) // 5,                       # headroom for Mosaic internal scratch
        multi_tc)
    grid = (pl.cdiv(nc, cb),)                        # ragged last block is masked by Pallas

    kernel = functools.partial(
        _avgpool_kernel,
        kh=k[0], kw=k[1], p_t=p_t, p_l=p_l, inv_area=1.0 / float(k[0] * k[1]),
    )

    out_cl = pl.pallas_call(
        kernel,
        out_shape=jax.ShapeDtypeStruct((ho, wo, nc), x.dtype),
        grid_spec=pltpu.PrefetchScalarGridSpec(
            num_scalar_prefetch=0,
            grid=grid,
            in_specs=[pl.BlockSpec((h, w, cb), lambda i: (0, 0, i))],
            out_specs=pl.BlockSpec((ho, wo, cb), lambda i: (0, 0, i)),
            scratch_shapes=[pltpu.VMEM((h, wo, cb), jnp.float32),
                            pltpu.VMEM((ho, wo, cb), jnp.float32)],
        ),
        compiler_params=pltpu.CompilerParams(
            dimension_semantics=("parallel",),
            vmem_limit_bytes=int(vmem_limit),
        ),
        # NOTE: pipeline_mode=pl.Buffered(3) on the input spec is a candidate to
        # sweep once per-step compute is this small (few-% win at most).
    )(x_cl)

    # TODO(synk): for very large spatial planes add a second grid axis over H with a
    # (kh-1)-row halo (overlapping pl.Element index_map) so a single plane never has
    # to fit in VMEM -- matters most on v7x (64 MiB VMEM).
    return jnp.transpose(out_cl.reshape(ho, wo, n, c), (2, 3, 0, 1))


# --------------------------------------------------------------------------- #
# Reference + test
# --------------------------------------------------------------------------- #
def _reference(x, kernel_size=3, stride=1, padding=0, same=True):
    k = _pair(kernel_size)
    s = _pair(stride)
    _, _, h, w = x.shape
    pads = _same_padding(h, w, k, s) if same else _quadruple(padding)
    p_l, p_r, p_t, p_b = pads
    ho = (h + p_t + p_b - k[0]) // s[0] + 1
    wo = (w + p_l + p_r - k[1]) // s[1] + 1
    return _avg_pool2d_xla(x, k, s, pads, ho, wo)


if __name__ == "__main__":
    key = jax.random.PRNGKey(0)
    k1, k2 = jax.random.split(key)

    # Primary test: module-default config on a small NCHW tensor.
    x = jax.random.normal(k1, (2, 4, 16, 16), dtype=jnp.float32)
    out = jax.block_until_ready(avg_pool2d(x, kernel_size=3, stride=1, padding=0, same=True))
    ref = _reference(x)
    assert out.shape == (2, 4, 16, 16), out.shape
    assert jnp.allclose(out, ref, atol=1e-5, rtol=1e-5), "f32 mismatch vs reference"

    # Deferred-upcast path: bf16 input, non-square spatial dims.
    xb = jax.random.normal(k2, (1, 3, 12, 8), dtype=jnp.bfloat16)
    outb = jax.block_until_ready(avg_pool2d(xb))
    refb = _reference(xb)
    assert outb.shape == (1, 3, 12, 8), outb.shape
    assert jnp.allclose(outb.astype(jnp.float32), refb.astype(jnp.float32),
                        atol=2e-2, rtol=2e-2), "bf16 mismatch vs reference"

    print("KERNEL_OK")
</pallas_src>

<mosaic_0001>
module attributes {stable_mosaic.version = 11 : i64} {
  func.func @_avgpool_kernel(%arg0: i32, %arg1: memref<16x16x8xf32, #tpu.memory_space<vmem>>, %arg2: memref<16x16x8xf32, #tpu.memory_space<vmem>>, %arg3: memref<16x16x8xf32, #tpu.memory_space<vmem>>, %arg4: memref<16x16x8xf32, #tpu.memory_space<vmem>>) attributes {dimension_semantics = [#tpu.dimension_semantics<parallel>], iteration_bounds = array<i64: 1>, scalar_prefetch = 0 : i64, scratch_operands = 2 : i64, tpu.core_type = #tpu.core_type<tc>, window_params = [{transform_indices = @transform_0, window_bounds = array<i64: 16, 16, 8>}, {transform_indices = @transform_1, window_bounds = array<i64: 16, 16, 8>}]} {
    %c0 = arith.constant 0 : index
    %c0_0 = arith.constant 0 : index
    %c0_1 = arith.constant 0 : index
    %0 = vector.load %arg1[%c0, %c0_0, %c0_1] : memref<16x16x8xf32, #tpu.memory_space<vmem>>, vector<16x16x8xf32>
    %c0_2 = arith.constant 0 : index
    %c0_3 = arith.constant 0 : index
    %c0_4 = arith.constant 0 : index
    %1 = vector.load %arg3[%c0_2, %c0_3, %c0_4] : memref<16x16x8xf32, #tpu.memory_space<vmem>>, vector<16x16x8xf32>
    tpu.vector_store %arg3[%c0_2, %c0_3, %c0_4], %0 {strides = array<i32>} : memref<16x16x8xf32, #tpu.memory_space<vmem>>, vector<16x16x8xf32>,
    %c0_5 = arith.constant 0 : index
    %c1 = arith.constant 1 : index
    %c0_6 = arith.constant 0 : index
    %2 = vector.load %arg3[%c0_5, %c1, %c0_6] : memref<16x16x8xf32, #tpu.memory_space<vmem>>, vector<16x15x8xf32>
    %c0_7 = arith.constant 0 : index
    %c0_8 = arith.constant 0 : index
    %c0_9 = arith.constant 0 : index
    %3 = vector.load %arg1[%c0_7, %c0_8, %c0_9] : memref<16x16x8xf32, #tpu.memory_space<vmem>>, vector<16x15x8xf32>
    %4 = arith.addf %2, %3 : vector<16x15x8xf32>
    %c0_10 = arith.constant 0 : index
    %c1_11 = arith.constant 1 : index
    %c0_12 = arith.constant 0 : index
    %5 = vector.load %arg3[%c0_10, %c1_11, %c0_12] : memref<16x16x8xf32, #tpu.memory_space<vmem>>, vector<16x15x8xf32>
    tpu.vector_store %arg3[%c0_10, %c1_11, %c0_12], %4 {strides = array<i32>} : memref<16x16x8xf32, #tpu.memory_space<vmem>>, vector<16x15x8xf32>,
    %c0_13 = arith.constant 0 : index
    %c0_14 = arith.constant 0 : index
    %c0_15 = arith.constant 0 : index
    %6 = vector.load %arg3[%c0_13, %c0_14, %c0_15] : memref<16x16x8xf32, #tpu.memory_space<vmem>>, vector<16x1x8xf32>
    %c0_16 = arith.constant 0 : index
    %c1_17 = arith.constant 1 : index
    %c0_18 = arith.constant 0 : index
    %7 = vector.load %arg1[%c0_16, %c1_17, %c0_18] : memref<16x16x8xf32, #tpu.memory_space<vmem>>, vector<16x1x8xf32>
    %8 = arith.addf %6, %7 : vector<16x1x8xf32>
    %c0_19 = arith.constant 0 : index
    %c0_20 = arith.constant 0 : index
    %c0_21 = arith.constant 0 : index
    %9 = vector.load %arg3[%c0_19, %c0_20, %c0_21] : memref<16x16x8xf32, #tpu.memory_space<vmem>>, vector<16x1x8xf32>
    tpu.vector_store %arg3[%c0_19, %c0_20, %c0_21], %8 {strides = array<i32>} : memref<16x16x8xf32, #tpu.memory_space<vmem>>, vector<16x1x8xf32>,
    %c0_22 = arith.constant 0 : index
    %c0_23 = arith.constant 0 : index
    %c0_24 = arith.constant 0 : index
    %10 = vector.load %arg3[%c0_22, %c0_23, %c0_24] : memref<16x16x8xf32, #tpu.memory_space<vmem>>, vector<16x15x8xf32>
    %c0_25 = arith.constant 0 : index
    %c1_26 = arith.constant 1 : index
    %c0_27 = arith.constant 0 : index
    %11 = vector.load %arg1[%c0_25, %c1_26, %c0_27] : memref<16x16x8xf32, #tpu.memory_space<vmem>>, vector<16x15x8xf32>
    %12 = arith.addf %10, %11 : vector<16x15x8xf32>
    %c0_28 = arith.constant 0 : index
    %c0_29 = arith.constant 0 : index
    %c0_30 = arith.constant 0 : index
    %13 = vector.load %arg3[%c0_28, %c0_29, %c0_30] : memref<16x16x8xf32, #tpu.memory_space<vmem>>, vector<16x15x8xf32>
    tpu.vector_store %arg3[%c0_28, %c0_29, %c0_30], %12 {strides = array<i32>} : memref<16x16x8xf32, #tpu.memory_space<vmem>>, vector<16x15x8xf32>,
    %c0_31 = arith.constant 0 : index
    %c15 = arith.constant 15 : index
    %c0_32 = arith.constant 0 : index
    %14 = vector.load %arg3[%c0_31, %c15, %c0_32] : memref<16x16x8xf32, #tpu.memory_space<vmem>>, vector<16x1x8xf32>
    %c0_33 = arith.constant 0 : index
    %c14 = arith.constant 14 : index
    %c0_34 = arith.constant 0 : index
    %15 = vector.load %arg1[%c0_33, %c14, %c0_34] : memref<16x16x8xf32, #tpu.memory_space<vmem>>, vector<16x1x8xf32>
    %16 = arith.addf %14, %15 : vector<16x1x8xf32>
    %c0_35 = arith.constant 0 : index
    %c15_36 = arith.constant 15 : index
    %c0_37 = arith.constant 0 : index
    %17 = vector.load %arg3[%c0_35, %c15_36, %c0_37] : memref<16x16x8xf32, #tpu.memory_space<vmem>>, vector<16x1x8xf32>
    tpu.vector_store %arg3[%c0_35, %c15_36, %c0_37], %16 {strides = array<i32>} : memref<16x16x8xf32, #tpu.memory_space<vmem>>, vector<16x1x8xf32>,
    %c0_38 = arith.constant 0 : index
    %c0_39 = arith.constant 0 : index
    %c0_40 = arith.constant 0 : index
    %18 = vector.load %arg3[%c0_38, %c0_39, %c0_40] : memref<16x16x8xf32, #tpu.memory_space<vmem>>, vector<16x16x8xf32>
    %c0_41 = arith.constant 0 : index
    %c0_42 = arith.constant 0 : index
    %c0_43 = arith.constant 0 : index
    %19 = vector.load %arg4[%c0_41, %c0_42, %c0_43] : memref<16x16x8xf32, #tpu.memory_space<vmem>>, vector<16x16x8xf32>
    tpu.vector_store %arg4[%c0_41, %c0_42, %c0_43], %18 {strides = array<i32>} : memref<16x16x8xf32, #tpu.memory_space<vmem>>, vector<16x16x8xf32>,
    %c1_44 = arith.constant 1 : index
    %c0_45 = arith.constant 0 : index
    %c0_46 = arith.constant 0 : index
    %20 = vector.load %arg4[%c1_44, %c0_45, %c0_46] : memref<16x16x8xf32, #tpu.memory_space<vmem>>, vector<15x16x8xf32>
    %c0_47 = arith.constant 0 : index
    %c0_48 = arith.constant 0 : index
    %c0_49 = arith.constant 0 : index
    %21 = vector.load %arg3[%c0_47, %c0_48, %c0_49] : memref<16x16x8xf32, #tpu.memory_space<vmem>>, vector<15x16x8xf32>
    %22 = arith.addf %20, %21 : vector<15x16x8xf32>
    %c1_50 = arith.constant 1 : index
    %c0_51 = arith.constant 0 : index
    %c0_52 = arith.constant 0 : index
    %23 = vector.load %arg4[%c1_50, %c0_51, %c0_52] : memref<16x16x8xf32, #tpu.memory_space<vmem>>, vector<15x16x8xf32>
    tpu.vector_store %arg4[%c1_50, %c0_51, %c0_52], %22 {strides = array<i32>} : memref<16x16x8xf32, #tpu.memory_space<vmem>>, vector<15x16x8xf32>,
    %c0_53 = arith.constant 0 : index
    %c0_54 = arith.constant 0 : index
    %c0_55 = arith.constant 0 : index
    %24 = vector.load %arg4[%c0_53, %c0_54, %c0_55] : memref<16x16x8xf32, #tpu.memory_space<vmem>>, vector<1x16x8xf32>
    %c1_56 = arith.constant 1 : index
    %c0_57 = arith.constant 0 : index
    %c0_58 = arith.constant 0 : index
    %25 = vector.load %arg3[%c1_56, %c0_57, %c0_58] : memref<16x16x8xf32, #tpu.memory_space<vmem>>, vector<1x16x8xf32>
    %26 = arith.addf %24, %25 : vector<1x16x8xf32>
    %c0_59 = arith.constant 0 : index
    %c0_60 = arith.constant 0 : index
    %c0_61 = arith.constant 0 : index
    %27 = vector.load %arg4[%c0_59, %c0_60, %c0_61] : memref<16x16x8xf32, #tpu.memory_space<vmem>>, vector<1x16x8xf32>
    tpu.vector_store %arg4[%c0_59, %c0_60, %c0_61], %26 {strides = array<i32>} : memref<16x16x8xf32, #tpu.memory_space<vmem>>, vector<1x16x8xf32>,
    %c0_62 = arith.constant 0 : index
    %c0_63 = arith.constant 0 : index
    %c0_64 = arith.constant 0 : index
    %28 = vector.load %arg4[%c0_62, %c0_63, %c0_64] : memref<16x16x8xf32, #tpu.memory_space<vmem>>, vector<15x16x8xf32>
    %c1_65 = arith.constant 1 : index
    %c0_66 = arith.constant 0 : index
    %c0_67 = arith.constant 0 : index
    %29 = vector.load %arg3[%c1_65, %c0_66, %c0_67] : memref<16x16x8xf32, #tpu.memory_space<vmem>>, vector<15x16x8xf32>
    %30 = arith.addf %28, %29 : vector<15x16x8xf32>
    %c0_68 = arith.constant 0 : index
    %c0_69 = arith.constant 0 : index
    %c0_70 = arith.constant 0 : index
    %31 = vector.load %arg4[%c0_68, %c0_69, %c0_70] : memref<16x16x8xf32, #tpu.memory_space<vmem>>, vector<15x16x8xf32>
    tpu.vector_store %arg4[%c0_68, %c0_69, %c0_70], %30 {strides = array<i32>} : memref<16x16x8xf32, #tpu.memory_space<vmem>>, vector<15x16x8xf32>,
    %c15_71 = arith.constant 15 : index
    %c0_72 = arith.constant 0 : index
    %c0_73 = arith.constant 0 : index
    %32 = vector.load %arg4[%c15_71, %c0_72, %c0_73] : memref<16x16x8xf32, #tpu.memory_space<vmem>>, vector<1x16x8xf32>
    %c14_74 = arith.constant 14 : index
    %c0_75 = arith.constant 0 : index
    %c0_76 = arith.constant 0 : index
    %33 = vector.load %arg3[%c14_74, %c0_75, %c0_76] : memref<16x16x8xf32, #tpu.memory_space<vmem>>, vector<1x16x8xf32>
    %34 = arith.addf %32, %33 : vector<1x16x8xf32>
    %c15_77 = arith.constant 15 : index
    %c0_78 = arith.constant 0 : index
    %c0_79 = arith.constant 0 : index
    %35 = vector.load %arg4[%c15_77, %c0_78, %c0_79] : memref<16x16x8xf32, #tpu.memory_space<vmem>>, vector<1x16x8xf32>
    tpu.vector_store %arg4[%c15_77, %c0_78, %c0_79], %34 {strides = array<i32>} : memref<16x16x8xf32, #tpu.memory_space<vmem>>, vector<1x16x8xf32>,
    %c0_80 = arith.constant 0 : index
    %c0_81 = arith.constant 0 : index
    %c0_82 = arith.constant 0 : index
    %36 = vector.load %arg4[%c0_80, %c0_81, %c0_82] : memref<16x16x8xf32, #tpu.memory_space<vmem>>, vector<16x16x8xf32>
    %cst = arith.constant 0.111111112 : f32
    %37 = vector.broadcast %cst : f32 to vector<16x16x8xf32>
    %38 = arith.mulf %36, %37 : vector<16x16x8xf32>
    %c0_83 = arith.constant 0 : index
    %c0_84 = arith.constant 0 : index
    %c0_85 = arith.constant 0 : index
    %39 = vector.load %arg2[%c0_83, %c0_84, %c0_85] : memref<16x16x8xf32, #tpu.memory_space<vmem>>, vector<16x16x8xf32>
    tpu.vector_store %arg2[%c0_83, %c0_84, %c0_85], %38 {strides = array<i32>} : memref<16x16x8xf32, #tpu.memory_space<vmem>>, vector<16x16x8xf32>,
    return
  }
  func.func @transform_0(%arg0: i32) -> (i32, i32, i32) {
    %c0_i32 = arith.constant 0 : i32
    %c0_i32_0 = arith.constant 0 : i32
    %c0_i32_1 = arith.constant 0 : i32
    return %c0_i32, %c0_i32_0, %arg0 : i32, i32, i32
  }
  func.func @transform_1(%arg0: i32) -> (i32, i32, i32) {
    %c0_i32 = arith.constant 0 : i32
    %c0_i32_0 = arith.constant 0 : i32
    %c0_i32_1 = arith.constant 0 : i32
    return %c0_i32, %c0_i32_0, %arg0 : i32, i32, i32
  }
}

</mosaic_0001>

<bundles_post_ra>
// kernel: tpu_custom_call.1
= control target key start
LH: loop header
LB: loop body
LE: loop exit
PB: predicated region body
PF: predicated region fallthrough
CT: control target
= control target key end

     0   :  { %vm40_vm0 = vcmask 64512   ;;  %vm170_vm1 = vcmask 63488   ;;  %vm250_vm2 = vcmask 57344   ;;  %s1805_s0 = inlined_call_operand.vmem [shape: f32[16,16,8], index: 0, kind: input, shape index: {}]   ;;  %s1806_s1 = inlined_call_operand.vmem [shape: f32[16,16,8], index: 1, kind: output, shape index: {}]  }
   0x1   :  { %v896_v0 = vld [vmem:[%s1805_s0] sm:$0xff]  ;;  %v9_v1 = vld [vmem:[%s1805_s0 + $0x8] sm:$0xff]  ;;  %v904_v2 = vld [vmem:[%s1805_s0 + $0x10] sm:$0xff] }
   0x2   :  { %41 = vst.msk [vmem:[#allocation2] sm:$0xff] %vm40_vm0, %v896_v0  ;;  %42 = vst.msk [vmem:[#allocation2 + $0x8] sm:$0xff] %vm40_vm0, %v9_v1  ;;  %v11_v3 = vld [vmem:[%s1805_s0 + $0x18] sm:$0xff]  ;;  %v917_v4 = vld [vmem:[%s1805_s0 + $0x20] sm:$0xff] }
   0x3   :  { %43 = vst.msk [vmem:[#allocation2 + $0x10] sm:$0xff] %vm40_vm0, %v904_v2  ;;  %v13_v5 = vld [vmem:[%s1805_s0 + $0x28] sm:$0xff]  ;;  %44 = vst.msk [vmem:[#allocation2 + $0x18] sm:$0xff] %vm40_vm0, %v11_v3  ;;  %v929_v6 = vld [vmem:[%s1805_s0 + $0x30] sm:$0xff] }
   0x4   :  { %45 = vst.msk [vmem:[#allocation2 + $0x20] sm:$0xff] %vm40_vm0, %v917_v4  ;;  %46 = vst.msk [vmem:[#allocation2 + $0x28] sm:$0xff] %vm40_vm0, %v13_v5  ;;  %v15_v7 = vld [vmem:[%s1805_s0 + $0x38] sm:$0xff]  ;;  %v937_v8 = vld [vmem:[%s1805_s0 + $0x40] sm:$0xff] }
   0x5   :  { %47 = vst.msk [vmem:[#allocation2 + $0x30] sm:$0xff] %vm40_vm0, %v929_v6  ;;  %48 = vst.msk [vmem:[#allocation2 + $0x38] sm:$0xff] %vm40_vm0, %v15_v7  ;;  %v17_v9 = vld [vmem:[%s1805_s0 + $0x48] sm:$0xff]  ;;  %v950_v10 = vld [vmem:[%s1805_s0 + $0x50] sm:$0xff] }
   0x6   :  { %49 = vst.msk [vmem:[#allocation2 + $0x40] sm:$0xff] %vm40_vm0, %v937_v8  ;;  %v19_v11 = vld [vmem:[%s1805_s0 + $0x58] sm:$0xff]  ;;  %50 = vst.msk [vmem:[#allocation2 + $0x48] sm:$0xff] %vm40_vm0, %v17_v9  ;;  %v962_v12 = vld [vmem:[%s1805_s0 + $0x60] sm:$0xff] }
   0x7   :  { %51 = vst.msk [vmem:[#allocation2 + $0x50] sm:$0xff] %vm40_vm0, %v950_v10  ;;  %52 = vst.msk [vmem:[#allocation2 + $0x58] sm:$0xff] %vm40_vm0, %v19_v11  ;;  %v21_v13 = vld [vmem:[%s1805_s0 + $0x68] sm:$0xff]  ;;  %v970_v14 = vld [vmem:[%s1805_s0 + $0x70] sm:$0xff] }
   0x8   :  { %53 = vst.msk [vmem:[#allocation2 + $0x60] sm:$0xff] %vm40_vm0, %v962_v12  ;;  %54 = vst.msk [vmem:[#allocation2 + $0x68] sm:$0xff] %vm40_vm0, %v21_v13  ;;  %v23_v15 = vld [vmem:[%s1805_s0 + $0x78] sm:$0xff]  ;;  %v983_v16 = vld [vmem:[%s1805_s0 + $0x80] sm:$0xff] }
   0x9   :  { %55 = vst.msk [vmem:[#allocation2 + $0x70] sm:$0xff] %vm40_vm0, %v970_v14  ;;  %v25_v17 = vld [vmem:[%s1805_s0 + $0x88] sm:$0xff]  ;;  %56 = vst.msk [vmem:[#allocation2 + $0x78] sm:$0xff] %vm40_vm0, %v23_v15  ;;  %v995_v18 = vld [vmem:[%s1805_s0 + $0x90] sm:$0xff] }
   0xa   :  { %57 = vst.msk [vmem:[#allocation2 + $0x80] sm:$0xff] %vm40_vm0, %v983_v16  ;;  %58 = vst.msk [vmem:[#allocation2 + $0x88] sm:$0xff] %vm40_vm0, %v25_v17  ;;  %v27_v19 = vld [vmem:[%s1805_s0 + $0x98] sm:$0xff]  ;;  %v1003_v20 = vld [vmem:[%s1805_s0 + $0xa0] sm:$0xff] }
   0xb   :  { %59 = vst.msk [vmem:[#allocation2 + $0x90] sm:$0xff] %vm40_vm0, %v995_v18  ;;  %60 = vst.msk [vmem:[#allocation2 + $0x98] sm:$0xff] %vm40_vm0, %v27_v19  ;;  %v29_v21 = vld [vmem:[%s1805_s0 + $0xa8] sm:$0xff]  ;;  %v1016_v22 = vld [vmem:[%s1805_s0 + $0xb0] sm:$0xff] }
   0xc   :  { %61 = vst.msk [vmem:[#allocation2 + $0xa0] sm:$0xff] %vm40_vm0, %v1003_v20  ;;  %v31_v23 = vld [vmem:[%s1805_s0 + $0xb8] sm:$0xff]  ;;  %62 = vst.msk [vmem:[#allocation2 + $0xa8] sm:$0xff] %vm40_vm0, %v29_v21  ;;  %v1028_v24 = vld [vmem:[%s1805_s0 + $0xc0] sm:$0xff] }
   0xd   :  { %63 = vst.msk [vmem:[#allocation2 + $0xb0] sm:$0xff] %vm40_vm0, %v1016_v22  ;;  %64 = vst.msk [vmem:[#allocation2 + $0xb8] sm:$0xff] %vm40_vm0, %v31_v23  ;;  %v33_v25 = vld [vmem:[%s1805_s0 + $0xc8] sm:$0xff]  ;;  %v1036_v26 = vld [vmem:[%s1805_s0 + $0xd0] sm:$0xff] }
   0xe   :  { %65 = vst.msk [vmem:[#allocation2 + $0xc0] sm:$0xff] %vm40_vm0, %v1028_v24  ;;  %66 = vst.msk [vmem:[#allocation2 + $0xc8] sm:$0xff] %vm40_vm0, %v33_v25  ;;  %v35_v27 = vld [vmem:[%s1805_s0 + $0xd8] sm:$0xff]  ;;  %v1049_v28 = vld [vmem:[%s1805_s0 + $0xe0] sm:$0xff] }
   0xf   :  { %67 = vst.msk [vmem:[#allocation2 + $0xd0] sm:$0xff] %vm40_vm0, %v1036_v26  ;;  %v37_v29 = vld [vmem:[%s1805_s0 + $0xe8] sm:$0xff]  ;;  %68 = vst.msk [vmem:[#allocation2 + $0xd8] sm:$0xff] %vm40_vm0, %v35_v27  ;;  %v1061_v30 = vld [vmem:[%s1805_s0 + $0xf0] sm:$0xff] }
  0x10   :  { %69 = vst.msk [vmem:[#allocation2 + $0xe0] sm:$0xff] %vm40_vm0, %v1049_v28  ;;  %70 = vst.msk [vmem:[#allocation2 + $0xe8] sm:$0xff] %vm40_vm0, %v37_v29  ;;  %v39_v31 = vld [vmem:[%s1805_s0 + $0xf8] sm:$0xff]  ;;  %v73_v32 = vld [vmem:[#allocation2 + $0x1] sm:$0xff] }
  0x11   :  { %71 = vst.msk [vmem:[#allocation2 + $0xf0] sm:$0xff] %vm40_vm0, %v1061_v30  ;;  %72 = vst.msk [vmem:[#allocation2 + $0xf8] sm:$0xff] %vm40_vm0, %v39_v31  ;;  %v137_v33 = vadd.f32 %v73_v32, %v896_v0  ;;  %v74_v34 = vld [vmem:[#allocation2 + $0x9] sm:$0x7f]  ;;  %v75_v36 = vld [vmem:[#allocation2 + $0x11] sm:$0xff] }
  0x12   :  { %v106_v35 = vld [vmem:[%s1805_s0 + $0x8] sm:$0x7f]  ;;  %v139_v38 = vadd.f32 %v75_v36, %v904_v2  ;;  %v76_v39 = vld [vmem:[#allocation2 + $0x19] sm:$0x7f]  ;;  %v79_v46 = vld [vmem:[#allocation2 + $0x31] sm:$0xff] }
  0x13   :  { %v138_v37 = vadd.f32 %v106_v35, %v74_v34  ;;  %v108_v40 = vld [vmem:[%s1805_s0 + $0x18] sm:$0x7f]  ;;  %v77_v41 = vld [vmem:[#allocation2 + $0x21] sm:$0xff]  ;;  %169 = vst.msk [vmem:[#allocation2 + $0x1] sm:$0xff] %vm40_vm0, %v137_v33  ;;  %v78_v44 = vld [vmem:[#allocation2 + $0x29] sm:$0x7f]  ;;  %v143_v48 = vadd.f32 %v79_v46, %v929_v6 }
  0x14   :  { %v140_v42 = vadd.f32 %v108_v40, %v76_v39  ;;  %v141_v43 = vadd.f32 %v77_v41, %v917_v4  ;;  %v110_v45 = vld [vmem:[%s1805_s0 + $0x28] sm:$0x7f]  ;;  %172 = vst.msk [vmem:[#allocation2 + $0x11] sm:$0xff] %vm40_vm0, %v139_v38  ;;  %v80_v49 = vld [vmem:[#allocation2 + $0x39] sm:$0x7f]  ;;  %v83_v56 = vld [vmem:[#allocation2 + $0x51] sm:$0xff] }
  0x15   :  { %171 = vst.msk [vmem:[#allocation2 + $0x9] sm:$0x7f] %vm170_vm1, %v138_v37  ;;  %v142_v47 = vadd.f32 %v110_v45, %v78_v44  ;;  %v112_v50 = vld [vmem:[%s1805_s0 + $0x38] sm:$0x7f]  ;;  %v81_v51 = vld [vmem:[#allocation2 + $0x41] sm:$0xff]  ;;  %v147_v58 = vadd.f32 %v83_v56, %v950_v10 }
  0x16   :  { %173 = vst.msk [vmem:[#allocation2 + $0x19] sm:$0x7f] %vm170_vm1, %v140_v42  ;;  %v144_v52 = vadd.f32 %v112_v50, %v80_v49  ;;  %v145_v53 = vadd.f32 %v81_v51, %v937_v8  ;;  %v82_v54 = vld [vmem:[#allocation2 + $0x49] sm:$0x7f]  ;;  %v84_v59 = vld [vmem:[#allocation2 + $0x59] sm:$0x7f] }
  0x17   :  { %174 = vst.msk [vmem:[#allocation2 + $0x21] sm:$0xff] %vm40_vm0, %v141_v43  ;;  %v114_v55 = vld [vmem:[%s1805_s0 + $0x48] sm:$0x7f]  ;;  %176 = vst.msk [vmem:[#allocation2 + $0x31] sm:$0xff] %vm40_vm0, %v143_v48  ;;  %v116_v60 = vld [vmem:[%s1805_s0 + $0x58] sm:$0x7f] }
  0x18   :  { %175 = vst.msk [vmem:[#allocation2 + $0x29] sm:$0x7f] %vm170_vm1, %v142_v47  ;;  %v146_v57 = vadd.f32 %v114_v55, %v82_v54  ;;  %v85_v61 = vld [vmem:[#allocation2 + $0x61] sm:$0xff]  ;;  %177 = vst.msk [vmem:[#allocation2 + $0x39] sm:$0x7f] %vm170_vm1, %v144_v52  ;;  %v148_v62 = vadd.f32 %v116_v60, %v84_v59  ;;  %v87_v2 = vld [vmem:[#allocation2 + $0x71] sm:$0xff] }
  0x19   :  { %178 = vst.msk [vmem:[#allocation2 + $0x41] sm:$0xff] %vm40_vm0, %v145_v53  ;;  %v149_v63 = vadd.f32 %v85_v61, %v962_v12  ;;  %v86_v0 = vld [vmem:[#allocation2 + $0x69] sm:$0x7f]  ;;  %180 = vst.msk [vmem:[#allocation2 + $0x51] sm:$0xff] %vm40_vm0, %v147_v58  ;;  %v151_v4 = vadd.f32 %v87_v2, %v970_v14  ;;  %v88_v5 = vld [vmem:[#allocation2 + $0x79] sm:$0x7f] }
  0x1a   :  { %v118_v1 = vld [vmem:[%s1805_s0 + $0x68] sm:$0x7f]  ;;  %179 = vst.msk [vmem:[#allocation2 + $0x49] sm:$0x7f] %vm170_vm1, %v146_v57  ;;  %v120_v6 = vld [vmem:[%s1805_s0 + $0x78] sm:$0x7f] }
  0x1b   :  { %v150_v3 = vadd.f32 %v118_v1, %v86_v0  ;;  %v89_v7 = vld [vmem:[#allocation2 + $0x81] sm:$0xff]  ;;  %181 = vst.msk [vmem:[#allocation2 + $0x59] sm:$0x7f] %vm170_vm1, %v148_v62  ;;  %v152_v8 = vadd.f32 %v120_v6, %v88_v5  ;;  %v90_v10 = vld [vmem:[#allocation2 + $0x89] sm:$0x7f]  ;;  %v91_v12 = vld [vmem:[#allocation2 + $0x91] sm:$0xff] }
  0x1c   :  { %182 = vst.msk [vmem:[#allocation2 + $0x61] sm:$0xff] %vm40_vm0, %v149_v63  ;;  %v153_v9 = vadd.f32 %v89_v7, %v983_v16  ;;  %v122_v11 = vld [vmem:[%s1805_s0 + $0x88] sm:$0x7f]  ;;  %184 = vst.msk [vmem:[#allocation2 + $0x71] sm:$0xff] %vm40_vm0, %v151_v4  ;;  %v155_v14 = vadd.f32 %v91_v12, %v995_v18  ;;  %v92_v15 = vld [vmem:[#allocation2 + $0x99] sm:$0x7f] }
  0x1d   :  { %183 = vst.msk [vmem:[#allocation2 + $0x69] sm:$0x7f] %vm170_vm1, %v150_v3  ;;  %v154_v13 = vadd.f32 %v122_v11, %v90_v10  ;;  %v124_v17 = vld [vmem:[%s1805_s0 + $0x98] sm:$0x7f]  ;;  %v93_v19 = vld [vmem:[#allocation2 + $0xa1] sm:$0xff] }
  0x1e   :  { %185 = vst.msk [vmem:[#allocation2 + $0x79] sm:$0x7f] %vm170_vm1, %v152_v8  ;;  %v156_v16 = vadd.f32 %v124_v17, %v92_v15  ;;  %v157_v21 = vadd.f32 %v93_v19, %v1003_v20  ;;  %v94_v23 = vld [vmem:[#allocation2 + $0xa9] sm:$0x7f]  ;;  %v95_v27 = vld [vmem:[#allocation2 + $0xb1] sm:$0xff]  ;;  %v97_v33 = vld [vmem:[#allocation2 + $0xc1] sm:$0xff] }
  0x1f   :  { %186 = vst.msk [vmem:[#allocation2 + $0x81] sm:$0xff] %vm40_vm0, %v153_v9  ;;  %v126_v25 = vld [vmem:[%s1805_s0 + $0xa8] sm:$0x7f]  ;;  %188 = vst.msk [vmem:[#allocation2 + $0x91] sm:$0xff] %vm40_vm0, %v155_v14  ;;  %v159_v29 = vadd.f32 %v95_v27, %v1016_v22  ;;  %v96_v31 = vld [vmem:[#allocation2 + $0xb9] sm:$0x7f]  ;;  %v161_v34 = vadd.f32 %v97_v33, %v1028_v24 }
  0x20   :  { %187 = vst.msk [vmem:[#allocation2 + $0x89] sm:$0x7f] %vm170_vm1, %v154_v13  ;;  %v158_v18 = vadd.f32 %v126_v25, %v94_v23  ;;  %v128_v32 = vld [vmem:[%s1805_s0 + $0xb8] sm:$0x7f]  ;;  %189 = vst.msk [vmem:[#allocation2 + $0x99] sm:$0x7f] %vm170_vm1, %v156_v16 }
  0x21   :  { %190 = vst.msk [vmem:[#allocation2 + $0xa1] sm:$0xff] %vm40_vm0, %v157_v21  ;;  %v160_v20 = vadd.f32 %v128_v32, %v96_v31  ;;  %v98_v35 = vld [vmem:[#allocation2 + $0xc9] sm:$0x7f]  ;;  %v99_v37 = vld [vmem:[#allocation2 + $0xd1] sm:$0xff]  ;;  %192 = vst.msk [vmem:[#allocation2 + $0xb1] sm:$0xff] %vm40_vm0, %v159_v29 }
  0x22   :  { %v130_v36 = vld [vmem:[%s1805_s0 + $0xc8] sm:$0x7f]  ;;  %191 = vst.msk [vmem:[#allocation2 + $0xa9] sm:$0x7f] %vm170_vm1, %v158_v18  ;;  %v163_v38 = vadd.f32 %v99_v37, %v1036_v26  ;;  %v100_v39 = vld [vmem:[#allocation2 + $0xd9] sm:$0x7f] }
  0x23   :  { %v162_v22 = vadd.f32 %v130_v36, %v98_v35  ;;  %v132_v40 = vld [vmem:[%s1805_s0 + $0xd8] sm:$0x7f]  ;;  %v101_v41 = vld [vmem:[#allocation2 + $0xe1] sm:$0xff]  ;;  %193 = vst.msk [vmem:[#allocation2 + $0xb9] sm:$0x7f] %vm170_vm1, %v160_v20 }
  0x24   :  { %194 = vst.msk [vmem:[#allocation2 + $0xc1] sm:$0xff] %vm40_vm0, %v161_v34  ;;  %v164_v24 = vadd.f32 %v132_v40, %v100_v39  ;;  %v165_v42 = vadd.f32 %v101_v41, %v1049_v28  ;;  %v102_v43 = vld [vmem:[#allocation2 + $0xe9] sm:$0x7f]  ;;  %v103_v45 = vld [vmem:[#allocation2 + $0xf1] sm:$0xff]  ;;  %196 = vst.msk [vmem:[#allocation2 + $0xd1] sm:$0xff] %vm40_vm0, %v163_v38 }
  0x25   :  { %v134_v44 = vld [vmem:[%s1805_s0 + $0xe8] sm:$0x7f]  ;;  %195 = vst.msk [vmem:[#allocation2 + $0xc9] sm:$0x7f] %vm170_vm1, %v162_v22  ;;  %v167_v46 = vadd.f32 %v103_v45, %v1061_v30  ;;  %v104_v47 = vld [vmem:[#allocation2 + $0xf9] sm:$0x7f] }
  0x26   :  { %v166_v26 = vadd.f32 %v134_v44, %v102_v43  ;;  %v136_v48 = vld [vmem:[%s1805_s0 + $0xf8] sm:$0x7f]  ;;  %v202_v28 = vld [vmem:[#allocation2] sm:$0x1]  ;;  %197 = vst.msk [vmem:[#allocation2 + $0xd9] sm:$0x7f] %vm170_vm1, %v164_v24 }
  0x27   :  { %198 = vst.msk [vmem:[#allocation2 + $0xe1] sm:$0xff] %vm40_vm0, %v165_v42  ;;  %v168_v49 = vadd.f32 %v136_v48, %v104_v47  ;;  %v218_v50 = vld [vmem:[%s1805_s0 + $0x1] sm:$0x1]  ;;  %v203_v51 = vld [vmem:[#allocation2 + $0x10] sm:$0x1]  ;;  %200 = vst.msk [vmem:[#allocation2 + $0xf1] sm:$0xff] %vm40_vm0, %v167_v46 }
  0x28   :  { %v219_v30 = vld [vmem:[%s1805_s0 + $0x11] sm:$0x1]  ;;  %199 = vst.msk [vmem:[#allocation2 + $0xe9] sm:$0x7f] %vm170_vm1, %v166_v26  ;;  %v234_v52 = vadd.f32 %v218_v50, %v202_v28  ;;  %v204_v54 = vld [vmem:[#allocation2 + $0x20] sm:$0x1] }
  0x29   :  { %v235_v53 = vadd.f32 %v219_v30, %v203_v51  ;;  %v220_v55 = vld [vmem:[%s1805_s0 + $0x21] sm:$0x1]  ;;  %v205_v56 = vld [vmem:[#allocation2 + $0x30] sm:$0x1]  ;;  %201 = vst.msk [vmem:[#allocation2 + $0xf9] sm:$0x7f] %vm170_vm1, %v168_v49 }
  0x2a   :  { %v236_v57 = vadd.f32 %v220_v55, %v204_v54  ;;  %v221_v58 = vld [vmem:[%s1805_s0 + $0x31] sm:$0x1]  ;;  %v206_v59 = vld [vmem:[#allocation2 + $0x40] sm:$0x1]  ;;  %v222_v60 = vld [vmem:[%s1805_s0 + $0x41] sm:$0x1] }
  0x2b   :  { %251 = vst.msk [vmem:[#allocation2] sm:$0x1] %vm250_vm2, %v234_v52  ;;  %252 = vst.msk [vmem:[#allocation2 + $0x10] sm:$0x1] %vm250_vm2, %v235_v53  ;;  %v237_v61 = vadd.f32 %v221_v58, %v205_v56  ;;  %v238_v62 = vadd.f32 %v222_v60, %v206_v59  ;;  %v207_v63 = vld [vmem:[#allocation2 + $0x50] sm:$0x1] }
  0x2c   :  { %v223_v0 = vld [vmem:[%s1805_s0 + $0x51] sm:$0x1]  ;;  %v208_v1 = vld [vmem:[#allocation2 + $0x60] sm:$0x1]  ;;  %253 = vst.msk [vmem:[#allocation2 + $0x20] sm:$0x1] %vm250_vm2, %v236_v57 }
  0x2d   :  { %v239_v2 = vadd.f32 %v223_v0, %v207_v63  ;;  %v224_v3 = vld [vmem:[%s1805_s0 + $0x61] sm:$0x1]  ;;  %v209_v4 = vld [vmem:[#allocation2 + $0x70] sm:$0x1]  ;;  %v225_v5 = vld [vmem:[%s1805_s0 + $0x71] sm:$0x1] }
  0x2e   :  { %254 = vst.msk [vmem:[#allocation2 + $0x30] sm:$0x1] %vm250_vm2, %v237_v61  ;;  %255 = vst.msk [vmem:[#allocation2 + $0x40] sm:$0x1] %vm250_vm2, %v238_v62  ;;  %v240_v6 = vadd.f32 %v224_v3, %v208_v1  ;;  %v241_v7 = vadd.f32 %v225_v5, %v209_v4  ;;  %v210_v8 = vld [vmem:[#allocation2 + $0x80] sm:$0x1] }
  0x2f   :  { %v226_v9 = vld [vmem:[%s1805_s0 + $0x81] sm:$0x1]  ;;  %v211_v10 = vld [vmem:[#allocation2 + $0x90] sm:$0x1]  ;;  %256 = vst.msk [vmem:[#allocation2 + $0x50] sm:$0x1] %vm250_vm2, %v239_v2 }
  0x30   :  { %v242_v11 = vadd.f32 %v226_v9, %v210_v8  ;;  %v227_v12 = vld [vmem:[%s1805_s0 + $0x91] sm:$0x1]  ;;  %v212_v13 = vld [vmem:[#allocation2 + $0xa0] sm:$0x1]  ;;  %v228_v14 = vld [vmem:[%s1805_s0 + $0xa1] sm:$0x1] }
  0x31   :  { %257 = vst.msk [vmem:[#allocation2 + $0x60] sm:$0x1] %vm250_vm2, %v240_v6  ;;  %258 = vst.msk [vmem:[#allocation2 + $0x70] sm:$0x1] %vm250_vm2, %v241_v7  ;;  %v243_v15 = vadd.f32 %v227_v12, %v211_v10  ;;  %v244_v17 = vadd.f32 %v228_v14, %v212_v13  ;;  %v213_v19 = vld [vmem:[#allocation2 + $0xb0] sm:$0x1] }
  0x32   :  { %v229_v16 = vld [vmem:[%s1805_s0 + $0xb1] sm:$0x1]  ;;  %v214_v21 = vld [vmem:[#allocation2 + $0xc0] sm:$0x1]  ;;  %259 = vst.msk [vmem:[#allocation2 + $0x80] sm:$0x1] %vm250_vm2, %v242_v11 }
  0x33   :  { %v245_v23 = vadd.f32 %v229_v16, %v213_v19  ;;  %v230_v25 = vld [vmem:[%s1805_s0 + $0xc1] sm:$0x1]  ;;  %v215_v27 = vld [vmem:[#allocation2 + $0xd0] sm:$0x1]  ;;  %v231_v18 = vld [vmem:[%s1805_s0 + $0xd1] sm:$0x1] }
  0x34   :  { %260 = vst.msk [vmem:[#allocation2 + $0x90] sm:$0x1] %vm250_vm2, %v243_v15  ;;  %261 = vst.msk [vmem:[#allocation2 + $0xa0] sm:$0x1] %vm250_vm2, %v244_v17  ;;  %v246_v29 = vadd.f32 %v230_v25, %v214_v21  ;;  %v247_v31 = vadd.f32 %v231_v18, %v215_v27  ;;  %v216_v32 = vld [vmem:[#allocation2 + $0xe0] sm:$0x1] }
  0x35   :  { %v232_v33 = vld [vmem:[%s1805_s0 + $0xe1] sm:$0x1]  ;;  %v217_v20 = vld [vmem:[#allocation2 + $0xf0] sm:$0x1]  ;;  %262 = vst.msk [vmem:[#allocation2 + $0xb0] sm:$0x1] %vm250_vm2, %v245_v23 }
  0x36   :  { %v248_v34 = vadd.f32 %v232_v33, %v216_v32  ;;  %v233_v35 = vld [vmem:[%s1805_s0 + $0xf1] sm:$0x1]  ;;  %v267_v36 = vld [vmem:[#allocation2] sm:$0xff]  ;;  %263 = vst.msk [vmem:[#allocation2 + $0xc0] sm:$0x1] %vm250_vm2, %v246_v29 }
  0x37   :  { %v299_v37 = vld [vmem:[%s1805_s0 + $0x1] sm:$0xff]  ;;  %264 = vst.msk [vmem:[#allocation2 + $0xd0] sm:$0x1] %vm250_vm2, %v247_v31  ;;  %v249_v22 = vadd.f32 %v233_v35, %v217_v20  ;;  %v300_v40 = vld [vmem:[%s1805_s0 + $0x9] sm:$0x7f]  ;;  %v269_v41 = vld [vmem:[#allocation2 + $0x10] sm:$0xff] }
  0x38   :  { %v331_v38 = vadd.f32 %v299_v37, %v267_v36  ;;  %v268_v39 = vld [vmem:[#allocation2 + $0x8] sm:$0x7f]  ;;  %265 = vst.msk [vmem:[#allocation2 + $0xe0] sm:$0x1] %vm250_vm2, %v248_v34  ;;  %v301_v42 = vld [vmem:[%s1805_s0 + $0x11] sm:$0xff]  ;;  %v271_v46 = vld [vmem:[#allocation2 + $0x20] sm:$0xff] }
  0x39   :  { %v332_v24 = vadd.f32 %v300_v40, %v268_v39  ;;  %v270_v43 = vld [vmem:[#allocation2 + $0x18] sm:$0x7f]  ;;  %266 = vst.msk [vmem:[#allocation2 + $0xf0] sm:$0x1] %vm250_vm2, %v249_v22  ;;  %v333_v45 = vadd.f32 %v301_v42, %v269_v41  ;;  %v303_v47 = vld [vmem:[%s1805_s0 + $0x21] sm:$0xff]  ;;  %v273_v50 = vld [vmem:[#allocation2 + $0x30] sm:$0xff] }
  0x3a   :  { %v302_v44 = vld [vmem:[%s1805_s0 + $0x19] sm:$0x7f]  ;;  %363 = vst.msk [vmem:[#allocation2] sm:$0xff] %vm40_vm0, %v331_v38  ;;  %v272_v48 = vld [vmem:[#allocation2 + $0x28] sm:$0x7f]  ;;  %v335_v28 = vadd.f32 %v303_v47, %v271_v46  ;;  %v305_v51 = vld [vmem:[%s1805_s0 + $0x31] sm:$0xff] }
  0x3b   :  { %v334_v26 = vadd.f32 %v302_v44, %v270_v43  ;;  %364 = vst.msk [vmem:[#allocation2 + $0x8] sm:$0x7f] %vm170_vm1, %v332_v24  ;;  %v304_v49 = vld [vmem:[%s1805_s0 + $0x29] sm:$0x7f]  ;;  %v337_v52 = vadd.f32 %v305_v51, %v273_v50  ;;  %v274_v53 = vld [vmem:[#allocation2 + $0x38] sm:$0x7f] }
  0x3c   :  { %365 = vst.msk [vmem:[#allocation2 + $0x10] sm:$0xff] %vm40_vm0, %v333_v45  ;;  %v336_v30 = vadd.f32 %v304_v49, %v272_v48  ;;  %v306_v54 = vld [vmem:[%s1805_s0 + $0x39] sm:$0x7f]  ;;  %v275_v55 = vld [vmem:[#allocation2 + $0x40] sm:$0xff]  ;;  %367 = vst.msk [vmem:[#allocation2 + $0x20] sm:$0xff] %vm40_vm0, %v335_v28 }
  0x3d   :  { %366 = vst.msk [vmem:[#allocation2 + $0x18] sm:$0x7f] %vm170_vm1, %v334_v26  ;;  %v338_v56 = vadd.f32 %v306_v54, %v274_v53  ;;  %v307_v57 = vld [vmem:[%s1805_s0 + $0x41] sm:$0xff]  ;;  %v308_v59 = vld [vmem:[%s1805_s0 + $0x49] sm:$0x7f]  ;;  %v277_v62 = vld [vmem:[#allocation2 + $0x50] sm:$0xff] }
  0x3e   :  { %v276_v58 = vld [vmem:[#allocation2 + $0x48] sm:$0x7f]  ;;  %368 = vst.msk [vmem:[#allocation2 + $0x28] sm:$0x7f] %vm170_vm1, %v336_v30  ;;  %v339_v60 = vadd.f32 %v307_v57, %v275_v55  ;;  %v309_v63 = vld [vmem:[%s1805_s0 + $0x51] sm:$0xff]  ;;  %v279_v3 = vld [vmem:[#allocation2 + $0x60] sm:$0xff] }
  0x3f   :  { %369 = vst.msk [vmem:[#allocation2 + $0x30] sm:$0xff] %vm40_vm0, %v337_v52  ;;  %v340_v61 = vadd.f32 %v308_v59, %v276_v58  ;;  %v278_v0 = vld [vmem:[#allocation2 + $0x58] sm:$0x7f]  ;;  %v341_v1 = vadd.f32 %v309_v63, %v277_v62  ;;  %v311_v4 = vld [vmem:[%s1805_s0 + $0x61] sm:$0xff]  ;;  %v312_v8 = vld [vmem:[%s1805_s0 + $0x69] sm:$0x7f] }
  0x40   :  { %370 = vst.msk [vmem:[#allocation2 + $0x38] sm:$0x7f] %vm170_vm1, %v338_v56  ;;  %v310_v2 = vld [vmem:[%s1805_s0 + $0x59] sm:$0x7f]  ;;  %v343_v6 = vadd.f32 %v311_v4, %v279_v3  ;;  %v280_v7 = vld [vmem:[#allocation2 + $0x68] sm:$0x7f] }
  0x41   :  { %371 = vst.msk [vmem:[#allocation2 + $0x40] sm:$0xff] %vm40_vm0, %v339_v60  ;;  %v342_v5 = vadd.f32 %v310_v2, %v278_v0  ;;  %v281_v9 = vld [vmem:[#allocation2 + $0x70] sm:$0xff]  ;;  %373 = vst.msk [vmem:[#allocation2 + $0x50] sm:$0xff] %vm40_vm0, %v341_v1  ;;  %v344_v10 = vadd.f32 %v312_v8, %v280_v7  ;;  %v282_v12 = vld [vmem:[#allocation2 + $0x78] sm:$0x7f] }
  0x42   :  { %372 = vst.msk [vmem:[#allocation2 + $0x48] sm:$0x7f] %vm170_vm1, %v340_v61  ;;  %v313_v11 = vld [vmem:[%s1805_s0 + $0x71] sm:$0xff]  ;;  %v314_v13 = vld [vmem:[%s1805_s0 + $0x79] sm:$0x7f]  ;;  %v283_v17 = vld [vmem:[#allocation2 + $0x80] sm:$0xff] }
  0x43   :  { %374 = vst.msk [vmem:[#allocation2 + $0x58] sm:$0x7f] %vm170_vm1, %v342_v5  ;;  %v345_v14 = vadd.f32 %v313_v11, %v281_v9  ;;  %v346_v15 = vadd.f32 %v314_v13, %v282_v12  ;;  %v315_v19 = vld [vmem:[%s1805_s0 + $0x81] sm:$0xff]  ;;  %376 = vst.msk [vmem:[#allocation2 + $0x68] sm:$0x7f] %vm170_vm1, %v344_v10  ;;  %v285_v25 = vld [vmem:[#allocation2 + $0x90] sm:$0xff] }
  0x44   :  { %375 = vst.msk [vmem:[#allocation2 + $0x60] sm:$0xff] %vm40_vm0, %v343_v6  ;;  %v284_v16 = vld [vmem:[#allocation2 + $0x88] sm:$0x7f]  ;;  %v347_v21 = vadd.f32 %v315_v19, %v283_v17  ;;  %v317_v27 = vld [vmem:[%s1805_s0 + $0x91] sm:$0xff]  ;;  %v318_v32 = vld [vmem:[%s1805_s0 + $0x99] sm:$0x7f] }
  0x45   :  { %v316_v23 = vld [vmem:[%s1805_s0 + $0x89] sm:$0x7f]  ;;  %377 = vst.msk [vmem:[#allocation2 + $0x70] sm:$0xff] %vm40_vm0, %v345_v14  ;;  %v349_v29 = vadd.f32 %v317_v27, %v285_v25  ;;  %v286_v31 = vld [vmem:[#allocation2 + $0x98] sm:$0x7f]  ;;  %v287_v33 = vld [vmem:[#allocation2 + $0xa0] sm:$0xff] }
  0x46   :  { %378 = vst.msk [vmem:[#allocation2 + $0x78] sm:$0x7f] %vm170_vm1, %v346_v15  ;;  %v348_v18 = vadd.f32 %v316_v23, %v284_v16  ;;  %v350_v20 = vadd.f32 %v318_v32, %v286_v31  ;;  %v319_v34 = vld [vmem:[%s1805_s0 + $0xa1] sm:$0xff]  ;;  %v320_v36 = vld [vmem:[%s1805_s0 + $0xa9] sm:$0x7f]  ;;  %v289_v38 = vld [vmem:[#allocation2 + $0xb0] sm:$0xff] }
  0x47   :  { %379 = vst.msk [vmem:[#allocation2 + $0x80] sm:$0xff] %vm40_vm0, %v347_v21  ;;  %v288_v35 = vld [vmem:[#allocation2 + $0xa8] sm:$0x7f]  ;;  %381 = vst.msk [vmem:[#allocation2 + $0x90] sm:$0xff] %vm40_vm0, %v349_v29  ;;  %v351_v37 = vadd.f32 %v319_v34, %v287_v33  ;;  %v321_v39 = vld [vmem:[%s1805_s0 + $0xb1] sm:$0xff] }
  0x48   :  { %380 = vst.msk [vmem:[#allocation2 + $0x88] sm:$0x7f] %vm170_vm1, %v348_v18  ;;  %v352_v22 = vadd.f32 %v320_v36, %v288_v35  ;;  %v290_v40 = vld [vmem:[#allocation2 + $0xb8] sm:$0x7f]  ;;  %382 = vst.msk [vmem:[#allocation2 + $0x98] sm:$0x7f] %vm170_vm1, %v350_v20  ;;  %v353_v41 = vadd.f32 %v321_v39, %v289_v38 }
  0x49   :  { %v322_v24 = vld [vmem:[%s1805_s0 + $0xb9] sm:$0x7f]  ;;  %v291_v42 = vld [vmem:[#allocation2 + $0xc0] sm:$0xff]  ;;  %383 = vst.msk [vmem:[#allocation2 + $0xa0] sm:$0xff] %vm40_vm0, %v351_v37  ;;  %v292_v26 = vld [vmem:[#allocation2 + $0xc8] sm:$0x7f] }
  0x4a   :  { %v323_v43 = vld [vmem:[%s1805_s0 + $0xc1] sm:$0xff]  ;;  %384 = vst.msk [vmem:[#allocation2 + $0xa8] sm:$0x7f] %vm170_vm1, %v352_v22  ;;  %v354_v44 = vadd.f32 %v322_v24, %v290_v40  ;;  %v324_v46 = vld [vmem:[%s1805_s0 + $0xc9] sm:$0x7f]  ;;  %v293_v47 = vld [vmem:[#allocation2 + $0xd0] sm:$0xff] }
  0x4b   :  { %v355_v45 = vadd.f32 %v323_v43, %v291_v42  ;;  %385 = vst.msk [vmem:[#allocation2 + $0xb0] sm:$0xff] %vm40_vm0, %v353_v41  ;;  %v356_v48 = vadd.f32 %v324_v46, %v292_v26  ;;  %v325_v28 = vld [vmem:[%s1805_s0 + $0xd1] sm:$0xff]  ;;  %v326_v50 = vld [vmem:[%s1805_s0 + $0xd9] sm:$0x7f]  ;;  %v295_v52 = vld [vmem:[#allocation2 + $0xe0] sm:$0xff] }
  0x4c   :  { %v294_v49 = vld [vmem:[#allocation2 + $0xd8] sm:$0x7f]  ;;  %386 = vst.msk [vmem:[#allocation2 + $0xb8] sm:$0x7f] %vm170_vm1, %v354_v44  ;;  %v357_v51 = vadd.f32 %v325_v28, %v293_v47  ;;  %v327_v53 = vld [vmem:[%s1805_s0 + $0xe1] sm:$0xff]  ;;  %v297_v57 = vld [vmem:[#allocation2 + $0xf0] sm:$0xff] }
  0x4d   :  { %387 = vst.msk [vmem:[#allocation2 + $0xc0] sm:$0xff] %vm40_vm0, %v355_v45  ;;  %v358_v30 = vadd.f32 %v326_v50, %v294_v49  ;;  %v296_v54 = vld [vmem:[#allocation2 + $0xe8] sm:$0x7f]  ;;  %v359_v55 = vadd.f32 %v327_v53, %v295_v52  ;;  %v329_v58 = vld [vmem:[%s1805_s0 + $0xf1] sm:$0xff]  ;;  %v330_v62 = vld [vmem:[%s1805_s0 + $0xf9] sm:$0x7f] }
  0x4e   :  { %388 = vst.msk [vmem:[#allocation2 + $0xc8] sm:$0x7f] %vm170_vm1, %v356_v48  ;;  %v328_v56 = vld [vmem:[%s1805_s0 + $0xe9] sm:$0x7f]  ;;  %v361_v60 = vadd.f32 %v329_v58, %v297_v57  ;;  %v298_v61 = vld [vmem:[#allocation2 + $0xf8] sm:$0x7f] }
  0x4f   :  { %389 = vst.msk [vmem:[#allocation2 + $0xd0] sm:$0xff] %vm40_vm0, %v357_v51  ;;  %v360_v59 = vadd.f32 %v328_v56, %v296_v54  ;;  %v395_v63 = vld [vmem:[#allocation2 + $0xf] sm:$0x1]  ;;  %391 = vst.msk [vmem:[#allocation2 + $0xe0] sm:$0xff] %vm40_vm0, %v359_v55  ;;  %v362_v0 = vadd.f32 %v330_v62, %v298_v61  ;;  %v411_v1 = vld [vmem:[%s1805_s0 + $0xe] sm:$0x1] }
  0x50   :  { %390 = vst.msk [vmem:[#allocation2 + $0xd8] sm:$0x7f] %vm170_vm1, %v358_v30  ;;  %v396_v2 = vld [vmem:[#allocation2 + $0x1f] sm:$0x1]  ;;  %v412_v3 = vld [vmem:[%s1805_s0 + $0x1e] sm:$0x1]  ;;  %v427_v4 = vadd.f32 %v411_v1, %v395_v63 }
  0x51   :  { %392 = vst.msk [vmem:[#allocation2 + $0xe8] sm:$0x7f] %vm170_vm1, %v360_v59  ;;  %v428_v5 = vadd.f32 %v412_v3, %v396_v2  ;;  %v397_v6 = vld [vmem:[#allocation2 + $0x2f] sm:$0x1]  ;;  %v413_v7 = vld [vmem:[%s1805_s0 + $0x2e] sm:$0x1] }
  0x52   :  { %393 = vst.msk [vmem:[#allocation2 + $0xf0] sm:$0xff] %vm40_vm0, %v361_v60  ;;  %v398_v8 = vld [vmem:[#allocation2 + $0x3f] sm:$0x1]  ;;  %v429_v9 = vadd.f32 %v413_v7, %v397_v6  ;;  %v414_v10 = vld [vmem:[%s1805_s0 + $0x3e] sm:$0x1]  ;;  %v1417_v28 = vld [vmem:[#allocation2] sm:$0xff] }
  0x53   :  { %394 = vst.msk [vmem:[#allocation2 + $0xf8] sm:$0x7f] %vm170_vm1, %v362_v0  ;;  %v399_v11 = vld [vmem:[#allocation2 + $0x4f] sm:$0x1]  ;;  %v415_v12 = vld [vmem:[%s1805_s0 + $0x4e] sm:$0x1]  ;;  %v430_v13 = vadd.f32 %v414_v10, %v398_v8 }
  0x54   :  { %443 = vst.msk [vmem:[#allocation2 + $0xf] sm:$0x1] %vm250_vm2, %v427_v4  ;;  %444 = vst.msk [vmem:[#allocation2 + $0x1f] sm:$0x1] %vm250_vm2, %v428_v5  ;;  %v431_v14 = vadd.f32 %v415_v12, %v399_v11  ;;  %v400_v15 = vld [vmem:[#allocation2 + $0x5f] sm:$0x1] }
  0x55   :  { %v416_v17 = vld [vmem:[%s1805_s0 + $0x5e] sm:$0x1]  ;;  %v401_v19 = vld [vmem:[#allocation2 + $0x6f] sm:$0x1]  ;;  %445 = vst.msk [vmem:[#allocation2 + $0x2f] sm:$0x1] %vm250_vm2, %v429_v9 }
  0x56   :  { %v432_v16 = vadd.f32 %v416_v17, %v400_v15  ;;  %v417_v21 = vld [vmem:[%s1805_s0 + $0x6e] sm:$0x1]  ;;  %v402_v23 = vld [vmem:[#allocation2 + $0x7f] sm:$0x1]  ;;  %v418_v25 = vld [vmem:[%s1805_s0 + $0x7e] sm:$0x1] }
  0x57   :  { %446 = vst.msk [vmem:[#allocation2 + $0x3f] sm:$0x1] %vm250_vm2, %v430_v13  ;;  %447 = vst.msk [vmem:[#allocation2 + $0x4f] sm:$0x1] %vm250_vm2, %v431_v14  ;;  %v433_v27 = vadd.f32 %v417_v21, %v401_v19  ;;  %v434_v18 = vadd.f32 %v418_v25, %v402_v23  ;;  %v403_v29 = vld [vmem:[#allocation2 + $0x8f] sm:$0x1] }
  0x58   :  { %v419_v31 = vld [vmem:[%s1805_s0 + $0x8e] sm:$0x1]  ;;  %v404_v32 = vld [vmem:[#allocation2 + $0x9f] sm:$0x1]  ;;  %448 = vst.msk [vmem:[#allocation2 + $0x5f] sm:$0x1] %vm250_vm2, %v432_v16 }
  0x59   :  { %v435_v33 = vadd.f32 %v419_v31, %v403_v29  ;;  %v420_v20 = vld [vmem:[%s1805_s0 + $0x9e] sm:$0x1]  ;;  %v405_v34 = vld [vmem:[#allocation2 + $0xaf] sm:$0x1]  ;;  %v421_v35 = vld [vmem:[%s1805_s0 + $0xae] sm:$0x1] }
  0x5a   :  { %449 = vst.msk [vmem:[#allocation2 + $0x6f] sm:$0x1] %vm250_vm2, %v433_v27  ;;  %450 = vst.msk [vmem:[#allocation2 + $0x7f] sm:$0x1] %vm250_vm2, %v434_v18  ;;  %v436_v36 = vadd.f32 %v420_v20, %v404_v32  ;;  %v437_v37 = vadd.f32 %v421_v35, %v405_v34  ;;  %v406_v22 = vld [vmem:[#allocation2 + $0xbf] sm:$0x1] }
  0x5b   :  { %v422_v38 = vld [vmem:[%s1805_s0 + $0xbe] sm:$0x1]  ;;  %v407_v39 = vld [vmem:[#allocation2 + $0xcf] sm:$0x1]  ;;  %451 = vst.msk [vmem:[#allocation2 + $0x8f] sm:$0x1] %vm250_vm2, %v435_v33 }
  0x5c   :  { %v438_v40 = vadd.f32 %v422_v38, %v406_v22  ;;  %v423_v41 = vld [vmem:[%s1805_s0 + $0xce] sm:$0x1]  ;;  %v408_v24 = vld [vmem:[#allocation2 + $0xdf] sm:$0x1]  ;;  %v424_v42 = vld [vmem:[%s1805_s0 + $0xde] sm:$0x1] }
  0x5d   :  { %452 = vst.msk [vmem:[#allocation2 + $0x9f] sm:$0x1] %vm250_vm2, %v436_v36  ;;  %453 = vst.msk [vmem:[#allocation2 + $0xaf] sm:$0x1] %vm250_vm2, %v437_v37  ;;  %v439_v43 = vadd.f32 %v423_v41, %v407_v39  ;;  %v440_v44 = vadd.f32 %v424_v42, %v408_v24  ;;  %v409_v45 = vld [vmem:[#allocation2 + $0xef] sm:$0x1] }
  0x5e   :  { %v425_v26 = vld [vmem:[%s1805_s0 + $0xee] sm:$0x1]  ;;  %v410_v46 = vld [vmem:[#allocation2 + $0xff] sm:$0x1]  ;;  %454 = vst.msk [vmem:[#allocation2 + $0xbf] sm:$0x1] %vm250_vm2, %v438_v40 }
  0x5f   :  { %v441_v47 = vadd.f32 %v425_v26, %v409_v45  ;;  %v426_v48 = vld [vmem:[%s1805_s0 + $0xfe] sm:$0x1]  ;;  %v1419_v49 = vld [vmem:[#allocation2 + $0x8] sm:$0xff]  ;;  %455 = vst.msk [vmem:[#allocation2 + $0xcf] sm:$0x1] %vm250_vm2, %v439_v43  ;;  %v1427_v51 = vld [vmem:[#allocation2 + $0x10] sm:$0xff] }
  0x60   :  { %456 = vst.msk [vmem:[#allocation2 + $0xdf] sm:$0x1] %vm250_vm2, %v440_v44  ;;  %v442_v50 = vadd.f32 %v426_v48, %v410_v46  ;;  %v1429_v30 = vld [vmem:[#allocation2 + $0x18] sm:$0xff]  ;;  %v1431_v52 = vld [vmem:[#allocation2 + $0x20] sm:$0xff]  ;;  %v1440_v53 = vld [vmem:[#allocation2 + $0x28] sm:$0xff] }
  0x61   :  { %491 = vst.msk [vmem:[#allocation3] sm:$0xff] %vm40_vm0, %v1417_v28  ;;  %492 = vst.msk [vmem:[#allocation3 + $0x8] sm:$0xff] %vm40_vm0, %v1419_v49  ;;  %v1442_v54 = vld [vmem:[#allocation2 + $0x30] sm:$0xff]  ;;  %v1444_v55 = vld [vmem:[#allocation2 + $0x38] sm:$0xff] }
  0x62   :  { %457 = vst.msk [vmem:[#allocation2 + $0xef] sm:$0x1] %vm250_vm2, %v441_v47  ;;  %458 = vst.msk [vmem:[#allocation2 + $0xff] sm:$0x1] %vm250_vm2, %v442_v50  ;;  %v1453_v56 = vld [vmem:[#allocation2 + $0x40] sm:$0xff]  ;;  %v1455_v57 = vld [vmem:[#allocation2 + $0x48] sm:$0xff] }
  0x63   :  { %493 = vst.msk [vmem:[#allocation3 + $0x10] sm:$0xff] %vm40_vm0, %v1427_v51  ;;  %494 = vst.msk [vmem:[#allocation3 + $0x18] sm:$0xff] %vm40_vm0, %v1429_v30  ;;  %v1457_v58 = vld [vmem:[#allocation2 + $0x50] sm:$0xff]  ;;  %v1465_v59 = vld [vmem:[#allocation2 + $0x58] sm:$0xff] }
  0x64   :  { %495 = vst.msk [vmem:[#allocation3 + $0x20] sm:$0xff] %vm40_vm0, %v1431_v52  ;;  %496 = vst.msk [vmem:[#allocation3 + $0x28] sm:$0xff] %vm40_vm0, %v1440_v53  ;;  %v1467_v60 = vld [vmem:[#allocation2 + $0x60] sm:$0xff]  ;;  %v1469_v61 = vld [vmem:[#allocation2 + $0x68] sm:$0xff] }
  0x65   :  { %497 = vst.msk [vmem:[#allocation3 + $0x30] sm:$0xff] %vm40_vm0, %v1442_v54  ;;  %498 = vst.msk [vmem:[#allocation3 + $0x38] sm:$0xff] %vm40_vm0, %v1444_v55  ;;  %v1477_v62 = vld [vmem:[#allocation2 + $0x70] sm:$0xff]  ;;  %v1479_v63 = vld [vmem:[#allocation2 + $0x78] sm:$0xff] }
  0x66   :  { %499 = vst.msk [vmem:[#allocation3 + $0x40] sm:$0xff] %vm40_vm0, %v1453_v56  ;;  %500 = vst.msk [vmem:[#allocation3 + $0x48] sm:$0xff] %vm40_vm0, %v1455_v57  ;;  %v1481_v0 = vld [vmem:[#allocation2 + $0x80] sm:$0xff]  ;;  %v1489_v1 = vld [vmem:[#allocation2 + $0x88] sm:$0xff] }
  0x67   :  { %501 = vst.msk [vmem:[#allocation3 + $0x50] sm:$0xff] %vm40_vm0, %v1457_v58  ;;  %502 = vst.msk [vmem:[#allocation3 + $0x58] sm:$0xff] %vm40_vm0, %v1465_v59  ;;  %v1491_v2 = vld [vmem:[#allocation2 + $0x90] sm:$0xff]  ;;  %v1493_v3 = vld [vmem:[#allocation2 + $0x98] sm:$0xff] }
  0x68   :  { %503 = vst.msk [vmem:[#allocation3 + $0x60] sm:$0xff] %vm40_vm0, %v1467_v60  ;;  %504 = vst.msk [vmem:[#allocation3 + $0x68] sm:$0xff] %vm40_vm0, %v1469_v61  ;;  %v1501_v4 = vld [vmem:[#allocation2 + $0xa0] sm:$0xff]  ;;  %v1503_v5 = vld [vmem:[#allocation2 + $0xa8] sm:$0xff] }
  0x69   :  { %505 = vst.msk [vmem:[#allocation3 + $0x70] sm:$0xff] %vm40_vm0, %v1477_v62  ;;  %506 = vst.msk [vmem:[#allocation3 + $0x78] sm:$0xff] %vm40_vm0, %v1479_v63  ;;  %v1505_v6 = vld [vmem:[#allocation2 + $0xb0] sm:$0xff]  ;;  %v1513_v7 = vld [vmem:[#allocation2 + $0xb8] sm:$0xff] }
  0x6a   :  { %507 = vst.msk [vmem:[#allocation3 + $0x80] sm:$0xff] %vm40_vm0, %v1481_v0  ;;  %508 = vst.msk [vmem:[#allocation3 + $0x88] sm:$0xff] %vm40_vm0, %v1489_v1  ;;  %v1515_v8 = vld [vmem:[#allocation2 + $0xc0] sm:$0xff]  ;;  %v1517_v9 = vld [vmem:[#allocation2 + $0xc8] sm:$0xff] }
  0x6b   :  { %509 = vst.msk [vmem:[#allocation3 + $0x90] sm:$0xff] %vm40_vm0, %v1491_v2  ;;  %510 = vst.msk [vmem:[#allocation3 + $0x98] sm:$0xff] %vm40_vm0, %v1493_v3  ;;  %v1525_v10 = vld [vmem:[#allocation2 + $0xd0] sm:$0xff]  ;;  %v1527_v11 = vld [vmem:[#allocation2 + $0xd8] sm:$0xff] }
  0x6c   :  { %511 = vst.msk [vmem:[#allocation3 + $0xa0] sm:$0xff] %vm40_vm0, %v1501_v4  ;;  %512 = vst.msk [vmem:[#allocation3 + $0xa8] sm:$0xff] %vm40_vm0, %v1503_v5  ;;  %v1529_v12 = vld [vmem:[#allocation2 + $0xe0] sm:$0xff]  ;;  %v1537_v13 = vld [vmem:[#allocation2 + $0xe8] sm:$0xff] }
  0x6d   :  { %513 = vst.msk [vmem:[#allocation3 + $0xb0] sm:$0xff] %vm40_vm0, %v1505_v6  ;;  %514 = vst.msk [vmem:[#allocation3 + $0xb8] sm:$0xff] %vm40_vm0, %v1513_v7  ;;  %v1539_v14 = vld [vmem:[#allocation2 + $0xf0] sm:$0xff]  ;;  %v1541_v15 = vld [vmem:[#allocation2 + $0xf8] sm:$0xff] }
  0x6e   :  { %515 = vst.msk [vmem:[#allocation3 + $0xc0] sm:$0xff] %vm40_vm0, %v1515_v8  ;;  %516 = vst.msk [vmem:[#allocation3 + $0xc8] sm:$0xff] %vm40_vm0, %v1517_v9  ;;  %v524_v17 = vld [vmem:[#allocation3 + $0x10] sm:$0xff]  ;;  %v525_v19 = vld [vmem:[#allocation3 + $0x18] sm:$0xff] }
  0x6f   :  { %517 = vst.msk [vmem:[#allocation3 + $0xd0] sm:$0xff] %vm40_vm0, %v1525_v10  ;;  %518 = vst.msk [vmem:[#allocation3 + $0xd8] sm:$0xff] %vm40_vm0, %v1527_v11  ;;  %v526_v16 = vld [vmem:[#allocation3 + $0x20] sm:$0xff]  ;;  %v584_v21 = vadd.f32 %v524_v17, %v1417_v28  ;;  %v585_v23 = vadd.f32 %v525_v19, %v1419_v49  ;;  %v527_v27 = vld [vmem:[#allocation3 + $0x28] sm:$0xff] }
  0x70   :  { %519 = vst.msk [vmem:[#allocation3 + $0xe0] sm:$0xff] %vm40_vm0, %v1529_v12  ;;  %520 = vst.msk [vmem:[#allocation3 + $0xe8] sm:$0xff] %vm40_vm0, %v1537_v13  ;;  %v586_v25 = vadd.f32 %v526_v16, %v1427_v51  ;;  %v528_v18 = vld [vmem:[#allocation3 + $0x30] sm:$0xff]  ;;  %v529_v29 = vld [vmem:[#allocation3 + $0x38] sm:$0xff]  ;;  %v587_v31 = vadd.f32 %v527_v27, %v1429_v30 }
  0x71   :  { %521 = vst.msk [vmem:[#allocation3 + $0xf0] sm:$0xff] %vm40_vm0, %v1539_v14  ;;  %522 = vst.msk [vmem:[#allocation3 + $0xf8] sm:$0xff] %vm40_vm0, %v1541_v15  ;;  %v588_v32 = vadd.f32 %v528_v18, %v1431_v52  ;;  %v589_v33 = vadd.f32 %v529_v29, %v1440_v53  ;;  %v530_v20 = vld [vmem:[#allocation3 + $0x40] sm:$0xff]  ;;  %v531_v34 = vld [vmem:[#allocation3 + $0x48] sm:$0xff] }
  0x72   :  { %v532_v35 = vld [vmem:[#allocation3 + $0x50] sm:$0xff]  ;;  %614 = vst.msk [vmem:[#allocation3 + $0x10] sm:$0xff] %vm40_vm0, %v584_v21  ;;  %615 = vst.msk [vmem:[#allocation3 + $0x18] sm:$0xff] %vm40_vm0, %v585_v23  ;;  %v590_v36 = vadd.f32 %v530_v20, %v1442_v54  ;;  %v591_v37 = vadd.f32 %v531_v34, %v1444_v55  ;;  %v533_v38 = vld [vmem:[#allocation3 + $0x58] sm:$0xff] }
  0x73   :  { %616 = vst.msk [vmem:[#allocation3 + $0x20] sm:$0xff] %vm40_vm0, %v586_v25  ;;  %v592_v22 = vadd.f32 %v532_v35, %v1453_v56  ;;  %v534_v39 = vld [vmem:[#allocation3 + $0x60] sm:$0xff]  ;;  %v535_v40 = vld [vmem:[#allocation3 + $0x68] sm:$0xff]  ;;  %617 = vst.msk [vmem:[#allocation3 + $0x28] sm:$0xff] %vm40_vm0, %v587_v31  ;;  %v593_v41 = vadd.f32 %v533_v38, %v1455_v57 }
  0x74   :  { %618 = vst.msk [vmem:[#allocation3 + $0x30] sm:$0xff] %vm40_vm0, %v588_v32  ;;  %619 = vst.msk [vmem:[#allocation3 + $0x38] sm:$0xff] %vm40_vm0, %v589_v33  ;;  %v594_v24 = vadd.f32 %v534_v39, %v1457_v58  ;;  %v595_v42 = vadd.f32 %v535_v40, %v1465_v59  ;;  %v536_v43 = vld [vmem:[#allocation3 + $0x70] sm:$0xff]  ;;  %v537_v44 = vld [vmem:[#allocation3 + $0x78] sm:$0xff] }
  0x75   :  { %v538_v45 = vld [vmem:[#allocation3 + $0x80] sm:$0xff]  ;;  %620 = vst.msk [vmem:[#allocation3 + $0x40] sm:$0xff] %vm40_vm0, %v590_v36  ;;  %621 = vst.msk [vmem:[#allocation3 + $0x48] sm:$0xff] %vm40_vm0, %v591_v37  ;;  %v596_v26 = vadd.f32 %v536_v43, %v1467_v60  ;;  %v597_v46 = vadd.f32 %v537_v44, %v1469_v61  ;;  %v539_v48 = vld [vmem:[#allocation3 + $0x88] sm:$0xff] }
  0x76   :  { %622 = vst.msk [vmem:[#allocation3 + $0x50] sm:$0xff] %vm40_vm0, %v592_v22  ;;  %v598_v47 = vadd.f32 %v538_v45, %v1477_v62  ;;  %v540_v28 = vld [vmem:[#allocation3 + $0x90] sm:$0xff]  ;;  %v541_v49 = vld [vmem:[#allocation3 + $0x98] sm:$0xff]  ;;  %623 = vst.msk [vmem:[#allocation3 + $0x58] sm:$0xff] %vm40_vm0, %v593_v41  ;;  %v599_v50 = vadd.f32 %v539_v48, %v1479_v63 }
  0x77   :  { %624 = vst.msk [vmem:[#allocation3 + $0x60] sm:$0xff] %vm40_vm0, %v594_v24  ;;  %625 = vst.msk [vmem:[#allocation3 + $0x68] sm:$0xff] %vm40_vm0, %v595_v42  ;;  %v600_v17 = vadd.f32 %v540_v28, %v1481_v0  ;;  %v601_v19 = vadd.f32 %v541_v49, %v1489_v1  ;;  %v542_v16 = vld [vmem:[#allocation3 + $0xa0] sm:$0xff]  ;;  %v543_v21 = vld [vmem:[#allocation3 + $0xa8] sm:$0xff] }
  0x78   :  { %v544_v23 = vld [vmem:[#allocation3 + $0xb0] sm:$0xff]  ;;  %626 = vst.msk [vmem:[#allocation3 + $0x70] sm:$0xff] %vm40_vm0, %v596_v26  ;;  %627 = vst.msk [vmem:[#allocation3 + $0x78] sm:$0xff] %vm40_vm0, %v597_v46  ;;  %v602_v25 = vadd.f32 %v542_v16, %v1491_v2  ;;  %v603_v27 = vadd.f32 %v543_v21, %v1493_v3  ;;  %v545_v29 = vld [vmem:[#allocation3 + $0xb8] sm:$0xff] }
  0x79   :  { %628 = vst.msk [vmem:[#allocation3 + $0x80] sm:$0xff] %vm40_vm0, %v598_v47  ;;  %v604_v18 = vadd.f32 %v544_v23, %v1501_v4  ;;  %v546_v31 = vld [vmem:[#allocation3 + $0xc0] sm:$0xff]  ;;  %v547_v32 = vld [vmem:[#allocation3 + $0xc8] sm:$0xff]  ;;  %629 = vst.msk [vmem:[#allocation3 + $0x88] sm:$0xff] %vm40_vm0, %v599_v50  ;;  %v605_v33 = vadd.f32 %v545_v29, %v1503_v5 }
  0x7a   :  { %630 = vst.msk [vmem:[#allocation3 + $0x90] sm:$0xff] %vm40_vm0, %v600_v17  ;;  %631 = vst.msk [vmem:[#allocation3 + $0x98] sm:$0xff] %vm40_vm0, %v601_v19  ;;  %v606_v20 = vadd.f32 %v546_v31, %v1505_v6  ;;  %v607_v34 = vadd.f32 %v547_v32, %v1513_v7  ;;  %v548_v35 = vld [vmem:[#allocation3 + $0xd0] sm:$0xff]  ;;  %v549_v36 = vld [vmem:[#allocation3 + $0xd8] sm:$0xff] }
  0x7b   :  { %v550_v37 = vld [vmem:[#allocation3 + $0xe0] sm:$0xff]  ;;  %632 = vst.msk [vmem:[#allocation3 + $0xa0] sm:$0xff] %vm40_vm0, %v602_v25  ;;  %633 = vst.msk [vmem:[#allocation3 + $0xa8] sm:$0xff] %vm40_vm0, %v603_v27  ;;  %v608_v22 = vadd.f32 %v548_v35, %v1515_v8  ;;  %v609_v38 = vadd.f32 %v549_v36, %v1517_v9  ;;  %v551_v40 = vld [vmem:[#allocation3 + $0xe8] sm:$0xff] }
  0x7c   :  { %634 = vst.msk [vmem:[#allocation3 + $0xb0] sm:$0xff] %vm40_vm0, %v604_v18  ;;  %v610_v39 = vadd.f32 %v550_v37, %v1525_v10  ;;  %v552_v41 = vld [vmem:[#allocation3 + $0xf0] sm:$0xff]  ;;  %v553_v24 = vld [vmem:[#allocation3 + $0xf8] sm:$0xff]  ;;  %635 = vst.msk [vmem:[#allocation3 + $0xb8] sm:$0xff] %vm40_vm0, %v605_v33  ;;  %v611_v42 = vadd.f32 %v551_v40, %v1527_v11 }
  0x7d   :  { %636 = vst.msk [vmem:[#allocation3 + $0xc0] sm:$0xff] %vm40_vm0, %v606_v20  ;;  %637 = vst.msk [vmem:[#allocation3 + $0xc8] sm:$0xff] %vm40_vm0, %v607_v34  ;;  %v612_v43 = vadd.f32 %v552_v41, %v1529_v12  ;;  %v613_v44 = vadd.f32 %v553_v24, %v1537_v13  ;;  %v644_v45 = vld [vmem:[#allocation3] sm:$0xff]  ;;  %v645_v26 = vld [vmem:[#allocation3 + $0x8] sm:$0xff] }
  0x7e   :  { %v655_v46 = vld [vmem:[#allocation3 + $0x10] sm:$0xff]  ;;  %638 = vst.msk [vmem:[#allocation3 + $0xd0] sm:$0xff] %vm40_vm0, %v608_v22  ;;  %639 = vst.msk [vmem:[#allocation3 + $0xd8] sm:$0xff] %vm40_vm0, %v609_v38  ;;  %v649_v47 = vadd.f32 %v644_v45, %v1427_v51  ;;  %v650_v48 = vadd.f32 %v645_v26, %v1429_v30  ;;  %v656_v49 = vld [vmem:[#allocation3 + $0x18] sm:$0xff] }
  0x7f   :  { %640 = vst.msk [vmem:[#allocation3 + $0xe0] sm:$0xff] %vm40_vm0, %v610_v39  ;;  %v715_v28 = vadd.f32 %v655_v46, %v1431_v52  ;;  %v657_v50 = vld [vmem:[#allocation3 + $0x20] sm:$0xff]  ;;  %v658_v17 = vld [vmem:[#allocation3 + $0x28] sm:$0xff]  ;;  %641 = vst.msk [vmem:[#allocation3 + $0xe8] sm:$0xff] %vm40_vm0, %v611_v42  ;;  %v716_v19 = vadd.f32 %v656_v49, %v1440_v53 }
  0x80   :  { %642 = vst.msk [vmem:[#allocation3 + $0xf0] sm:$0xff] %vm40_vm0, %v612_v43  ;;  %643 = vst.msk [vmem:[#allocation3 + $0xf8] sm:$0xff] %vm40_vm0, %v613_v44  ;;  %v717_v16 = vadd.f32 %v657_v50, %v1442_v54  ;;  %v718_v21 = vadd.f32 %v658_v17, %v1444_v55  ;;  %v659_v23 = vld [vmem:[#allocation3 + $0x30] sm:$0xff]  ;;  %v660_v25 = vld [vmem:[#allocation3 + $0x38] sm:$0xff] }
  0x81   :  { %v661_v27 = vld [vmem:[#allocation3 + $0x40] sm:$0xff]  ;;  %651 = vst.msk [vmem:[#allocation3] sm:$0xff] %vm40_vm0, %v649_v47  ;;  %652 = vst.msk [vmem:[#allocation3 + $0x8] sm:$0xff] %vm40_vm0, %v650_v48  ;;  %v719_v52 = vadd.f32 %v659_v23, %v1453_v56  ;;  %v720_v18 = vadd.f32 %v660_v25, %v1455_v57  ;;  %v662_v53 = vld [vmem:[#allocation3 + $0x48] sm:$0xff] }
  0x82   :  { %745 = vst.msk [vmem:[#allocation3 + $0x10] sm:$0xff] %vm40_vm0, %v715_v28  ;;  %v721_v29 = vadd.f32 %v661_v27, %v1457_v58  ;;  %v663_v31 = vld [vmem:[#allocation3 + $0x50] sm:$0xff]  ;;  %v664_v54 = vld [vmem:[#allocation3 + $0x58] sm:$0xff]  ;;  %746 = vst.msk [vmem:[#allocation3 + $0x18] sm:$0xff] %vm40_vm0, %v716_v19  ;;  %v722_v55 = vadd.f32 %v662_v53, %v1465_v59 }
  0x83   :  { %747 = vst.msk [vmem:[#allocation3 + $0x20] sm:$0xff] %vm40_vm0, %v717_v16  ;;  %748 = vst.msk [vmem:[#allocation3 + $0x28] sm:$0xff] %vm40_vm0, %v718_v21  ;;  %v723_v32 = vadd.f32 %v663_v31, %v1467_v60  ;;  %v724_v33 = vadd.f32 %v664_v54, %v1469_v61  ;;  %v665_v56 = vld [vmem:[#allocation3 + $0x60] sm:$0xff]  ;;  %v666_v20 = vld [vmem:[#allocation3 + $0x68] sm:$0xff] }
  0x84   :  { %v667_v57 = vld [vmem:[#allocation3 + $0x70] sm:$0xff]  ;;  %749 = vst.msk [vmem:[#allocation3 + $0x30] sm:$0xff] %vm40_vm0, %v719_v52  ;;  %750 = vst.msk [vmem:[#allocation3 + $0x38] sm:$0xff] %vm40_vm0, %v720_v18  ;;  %v725_v58 = vadd.f32 %v665_v56, %v1477_v62  ;;  %v726_v34 = vadd.f32 %v666_v20, %v1479_v63  ;;  %v668_v59 = vld [vmem:[#allocation3 + $0x78] sm:$0xff] }
  0x85   :  { %751 = vst.msk [vmem:[#allocation3 + $0x40] sm:$0xff] %vm40_vm0, %v721_v29  ;;  %v727_v35 = vadd.f32 %v667_v57, %v1481_v0  ;;  %v669_v36 = vld [vmem:[#allocation3 + $0x80] sm:$0xff]  ;;  %v670_v60 = vld [vmem:[#allocation3 + $0x88] sm:$0xff]  ;;  %752 = vst.msk [vmem:[#allocation3 + $0x48] sm:$0xff] %vm40_vm0, %v722_v55  ;;  %v728_v61 = vadd.f32 %v668_v59, %v1489_v1 }
  0x86   :  { %753 = vst.msk [vmem:[#allocation3 + $0x50] sm:$0xff] %vm40_vm0, %v723_v32  ;;  %754 = vst.msk [vmem:[#allocation3 + $0x58] sm:$0xff] %vm40_vm0, %v724_v33  ;;  %v729_v37 = vadd.f32 %v669_v36, %v1491_v2  ;;  %v730_v22 = vadd.f32 %v670_v60, %v1493_v3  ;;  %v671_v62 = vld [vmem:[#allocation3 + $0x90] sm:$0xff]  ;;  %v672_v38 = vld [vmem:[#allocation3 + $0x98] sm:$0xff] }
  0x87   :  { %v673_v63 = vld [vmem:[#allocation3 + $0xa0] sm:$0xff]  ;;  %755 = vst.msk [vmem:[#allocation3 + $0x60] sm:$0xff] %vm40_vm0, %v725_v58  ;;  %756 = vst.msk [vmem:[#allocation3 + $0x68] sm:$0xff] %vm40_vm0, %v726_v34  ;;  %v731_v0 = vadd.f32 %v671_v62, %v1501_v4  ;;  %v732_v39 = vadd.f32 %v672_v38, %v1503_v5  ;;  %v674_v1 = vld [vmem:[#allocation3 + $0xa8] sm:$0xff] }
  0x88   :  { %757 = vst.msk [vmem:[#allocation3 + $0x70] sm:$0xff] %vm40_vm0, %v727_v35  ;;  %v733_v40 = vadd.f32 %v673_v63, %v1505_v6  ;;  %v675_v41 = vld [vmem:[#allocation3 + $0xb0] sm:$0xff]  ;;  %v676_v2 = vld [vmem:[#allocation3 + $0xb8] sm:$0xff]  ;;  %758 = vst.msk [vmem:[#allocation3 + $0x78] sm:$0xff] %vm40_vm0, %v728_v61  ;;  %v734_v3 = vadd.f32 %v674_v1, %v1513_v7 }
  0x89   :  { %759 = vst.msk [vmem:[#allocation3 + $0x80] sm:$0xff] %vm40_vm0, %v729_v37  ;;  %760 = vst.msk [vmem:[#allocation3 + $0x88] sm:$0xff] %vm40_vm0, %v730_v22  ;;  %v735_v24 = vadd.f32 %v675_v41, %v1515_v8  ;;  %v736_v42 = vadd.f32 %v676_v2, %v1517_v9  ;;  %v677_v4 = vld [vmem:[#allocation3 + $0xc0] sm:$0xff]  ;;  %v678_v43 = vld [vmem:[#allocation3 + $0xc8] sm:$0xff] }
  0x8a   :  { %v679_v5 = vld [vmem:[#allocation3 + $0xd0] sm:$0xff]  ;;  %761 = vst.msk [vmem:[#allocation3 + $0x90] sm:$0xff] %vm40_vm0, %v731_v0  ;;  %762 = vst.msk [vmem:[#allocation3 + $0x98] sm:$0xff] %vm40_vm0, %v732_v39  ;;  %v737_v6 = vadd.f32 %v677_v4, %v1525_v10  ;;  %v738_v44 = vadd.f32 %v678_v43, %v1527_v11  ;;  %v680_v7 = vld [vmem:[#allocation3 + $0xd8] sm:$0xff] }
  0x8b   :  { %763 = vst.msk [vmem:[#allocation3 + $0xa0] sm:$0xff] %vm40_vm0, %v733_v40  ;;  %v739_v45 = vadd.f32 %v679_v5, %v1529_v12  ;;  %v681_v26 = vld [vmem:[#allocation3 + $0xe0] sm:$0xff]  ;;  %v682_v8 = vld [vmem:[#allocation3 + $0xe8] sm:$0xff]  ;;  %764 = vst.msk [vmem:[#allocation3 + $0xa8] sm:$0xff] %vm40_vm0, %v734_v3  ;;  %v740_v47 = vadd.f32 %v680_v7, %v1537_v13 }
  0x8c   :  { %v653_v46 = vld [vmem:[#allocation3] sm:$0xff]  ;;  %v654_v9 = vld [vmem:[#allocation3 + $0x8] sm:$0xff]  ;;  %765 = vst.msk [vmem:[#allocation3 + $0xb0] sm:$0xff] %vm40_vm0, %v735_v24  ;;  %766 = vst.msk [vmem:[#allocation3 + $0xb8] sm:$0xff] %vm40_vm0, %v736_v42  ;;  %v741_v48 = vadd.f32 %v681_v26, %v1539_v14  ;;  %v742_v10 = vadd.f32 %v682_v8, %v1541_v15 }
  0x8d   :  { %v774_v11 = vld [vmem:[#allocation3 + $0xf0] sm:$0xff]  ;;  %v713_v28 = vadd.f32 %v653_v46, %v1427_v51  ;;  %v714_v49 = vadd.f32 %v654_v9, %v1429_v30  ;;  %767 = vst.msk [vmem:[#allocation3 + $0xc0] sm:$0xff] %vm40_vm0, %v737_v6  ;;  %768 = vst.msk [vmem:[#allocation3 + $0xc8] sm:$0xff] %vm40_vm0, %v738_v44  ;;  %v775_v17 = vld [vmem:[#allocation3 + $0xf8] sm:$0xff] }
  0x8e   :  { %769 = vst.msk [vmem:[#allocation3 + $0xd0] sm:$0xff] %vm40_vm0, %v739_v45  ;;  %v779_v50 = vadd.f32 %v774_v11, %v1529_v12  ;;  %v785_v19 = vld [vmem:[#allocation3 + $0x10] sm:$0xff]  ;;  %v786_v16 = vld [vmem:[#allocation3 + $0x18] sm:$0xff]  ;;  %770 = vst.msk [vmem:[#allocation3 + $0xd8] sm:$0xff] %vm40_vm0, %v740_v47  ;;  %v780_v51 = vadd.f32 %v775_v17, %v1537_v13 }
  0x8f   :  { %771 = vst.msk [vmem:[#allocation3 + $0xe0] sm:$0xff] %vm40_vm0, %v741_v48  ;;  %772 = vst.msk [vmem:[#allocation3 + $0xe8] sm:$0xff] %vm40_vm0, %v742_v10  ;;  %v817_v30 = vmul.f32 0.11111111, %v785_v19  ;;  %v818_v14 = vmul.f32 0.11111111, %v786_v16 }
  0x90   :  { %v787_v15 = vld [vmem:[#allocation3 + $0x20] sm:$0xff]  ;;  %v788_v21 = vld [vmem:[#allocation3 + $0x28] sm:$0xff]  ;;  %743 = vst.msk [vmem:[#allocation3] sm:$0xff] %vm40_vm0, %v713_v28  ;;  %744 = vst.msk [vmem:[#allocation3 + $0x8] sm:$0xff] %vm40_vm0, %v714_v49 }
  0x91   :  { %781 = vst.msk [vmem:[#allocation3 + $0xf0] sm:$0xff] %vm40_vm0, %v779_v50  ;;  %v819_v12 = vmul.f32 0.11111111, %v787_v15  ;;  %v820_v23 = vmul.f32 0.11111111, %v788_v21  ;;  %v789_v25 = vld [vmem:[#allocation3 + $0x30] sm:$0xff] }
  0x92   :  { %v790_v27 = vld [vmem:[#allocation3 + $0x38] sm:$0xff]  ;;  %782 = vst.msk [vmem:[#allocation3 + $0xf8] sm:$0xff] %vm40_vm0, %v780_v51  ;;  %849 = vst.msk [vmem:[%s1806_s1 + $0x10] sm:$0xff] %vm40_vm0, %v817_v30  ;;  %v821_v13 = vmul.f32 0.11111111, %v789_v25  ;;  %v791_v18 = vld [vmem:[#allocation3 + $0x40] sm:$0xff] }
  0x93   :  { %850 = vst.msk [vmem:[%s1806_s1 + $0x18] sm:$0xff] %vm40_vm0, %v818_v14  ;;  %v822_v52 = vmul.f32 0.11111111, %v790_v27  ;;  %v792_v29 = vld [vmem:[#allocation3 + $0x48] sm:$0xff]  ;;  %851 = vst.msk [vmem:[%s1806_s1 + $0x20] sm:$0xff] %vm40_vm0, %v819_v12  ;;  %v793_v54 = vld [vmem:[#allocation3 + $0x50] sm:$0xff] }
  0x94   :  { %852 = vst.msk [vmem:[%s1806_s1 + $0x28] sm:$0xff] %vm40_vm0, %v820_v23  ;;  %v823_v53 = vmul.f32 0.11111111, %v791_v18  ;;  %v824_v31 = vmul.f32 0.11111111, %v792_v29  ;;  %v794_v55 = vld [vmem:[#allocation3 + $0x58] sm:$0xff] }
  0x95   :  { %853 = vst.msk [vmem:[%s1806_s1 + $0x30] sm:$0xff] %vm40_vm0, %v821_v13  ;;  %854 = vst.msk [vmem:[%s1806_s1 + $0x38] sm:$0xff] %vm40_vm0, %v822_v52  ;;  %v825_v32 = vmul.f32 0.11111111, %v793_v54  ;;  %v826_v33 = vmul.f32 0.11111111, %v794_v55 }
  0x96   :  { %v795_v56 = vld [vmem:[#allocation3 + $0x60] sm:$0xff]  ;;  %v796_v20 = vld [vmem:[#allocation3 + $0x68] sm:$0xff]  ;;  %855 = vst.msk [vmem:[%s1806_s1 + $0x40] sm:$0xff] %vm40_vm0, %v823_v53  ;;  %856 = vst.msk [vmem:[%s1806_s1 + $0x48] sm:$0xff] %vm40_vm0, %v824_v31 }
  0x97   :  { %v827_v57 = vmul.f32 0.11111111, %v795_v56  ;;  %v828_v58 = vmul.f32 0.11111111, %v796_v20  ;;  %v797_v34 = vld [vmem:[#allocation3 + $0x70] sm:$0xff]  ;;  %v798_v35 = vld [vmem:[#allocation3 + $0x78] sm:$0xff] }
  0x98   :  { %857 = vst.msk [vmem:[%s1806_s1 + $0x50] sm:$0xff] %vm40_vm0, %v825_v32  ;;  %858 = vst.msk [vmem:[%s1806_s1 + $0x58] sm:$0xff] %vm40_vm0, %v826_v33  ;;  %v829_v59 = vmul.f32 0.11111111, %v797_v34  ;;  %v830_v36 = vmul.f32 0.11111111, %v798_v35 }
  0x99   :  { %v799_v60 = vld [vmem:[#allocation3 + $0x80] sm:$0xff]  ;;  %v800_v61 = vld [vmem:[#allocation3 + $0x88] sm:$0xff]  ;;  %859 = vst.msk [vmem:[%s1806_s1 + $0x60] sm:$0xff] %vm40_vm0, %v827_v57  ;;  %860 = vst.msk [vmem:[%s1806_s1 + $0x68] sm:$0xff] %vm40_vm0, %v828_v58 }
  0x9a   :  { %v831_v37 = vmul.f32 0.11111111, %v799_v60  ;;  %v832_v22 = vmul.f32 0.11111111, %v800_v61  ;;  %v801_v62 = vld [vmem:[#allocation3 + $0x90] sm:$0xff]  ;;  %v802_v38 = vld [vmem:[#allocation3 + $0x98] sm:$0xff] }
  0x9b   :  { %v783_v63 = vld [vmem:[#allocation3] sm:$0xff]  ;;  %v784_v0 = vld [vmem:[#allocation3 + $0x8] sm:$0xff]  ;;  %861 = vst.msk [vmem:[%s1806_s1 + $0x70] sm:$0xff] %vm40_vm0, %v829_v59  ;;  %862 = vst.msk [vmem:[%s1806_s1 + $0x78] sm:$0xff] %vm40_vm0, %v830_v36  ;;  %v833_v39 = vmul.f32 0.11111111, %v801_v62 }
  0x9c   :  { %v834_v40 = vmul.f32 0.11111111, %v802_v38  ;;  %v815_v1 = vmul.f32 0.11111111, %v783_v63  ;;  %v816_v41 = vmul.f32 0.11111111, %v784_v0 }
  0x9d   :  { %863 = vst.msk [vmem:[%s1806_s1 + $0x80] sm:$0xff] %vm40_vm0, %v831_v37  ;;  %864 = vst.msk [vmem:[%s1806_s1 + $0x88] sm:$0xff] %vm40_vm0, %v832_v22  ;;  %v803_v2 = vld [vmem:[#allocation3 + $0xa0] sm:$0xff]  ;;  %v804_v3 = vld [vmem:[#allocation3 + $0xa8] sm:$0xff] }
  0x9e   :  { %865 = vst.msk [vmem:[%s1806_s1 + $0x90] sm:$0xff] %vm40_vm0, %v833_v39  ;;  %866 = vst.msk [vmem:[%s1806_s1 + $0x98] sm:$0xff] %vm40_vm0, %v834_v40  ;;  %v835_v24 = vmul.f32 0.11111111, %v803_v2  ;;  %v836_v42 = vmul.f32 0.11111111, %v804_v3 }
  0x9f   :  { %v805_v4 = vld [vmem:[#allocation3 + $0xb0] sm:$0xff]  ;;  %v806_v43 = vld [vmem:[#allocation3 + $0xb8] sm:$0xff]  ;;  %847 = vst.msk [vmem:[%s1806_s1] sm:$0xff] %vm40_vm0, %v815_v1  ;;  %848 = vst.msk [vmem:[%s1806_s1 + $0x8] sm:$0xff] %vm40_vm0, %v816_v41 }
  0xa0   :  { %v837_v5 = vmul.f32 0.11111111, %v805_v4  ;;  %v838_v6 = vmul.f32 0.11111111, %v806_v43  ;;  %v807_v44 = vld [vmem:[#allocation3 + $0xc0] sm:$0xff]  ;;  %v808_v45 = vld [vmem:[#allocation3 + $0xc8] sm:$0xff] }
  0xa1   :  { %867 = vst.msk [vmem:[%s1806_s1 + $0xa0] sm:$0xff] %vm40_vm0, %v835_v24  ;;  %868 = vst.msk [vmem:[%s1806_s1 + $0xa8] sm:$0xff] %vm40_vm0, %v836_v42  ;;  %v839_v7 = vmul.f32 0.11111111, %v807_v44  ;;  %v840_v26 = vmul.f32 0.11111111, %v808_v45 }
  0xa2   :  { %v809_v8 = vld [vmem:[#allocation3 + $0xd0] sm:$0xff]  ;;  %v810_v46 = vld [vmem:[#allocation3 + $0xd8] sm:$0xff]  ;;  %869 = vst.msk [vmem:[%s1806_s1 + $0xb0] sm:$0xff] %vm40_vm0, %v837_v5  ;;  %870 = vst.msk [vmem:[%s1806_s1 + $0xb8] sm:$0xff] %vm40_vm0, %v838_v6 }
  0xa3   :  { %v841_v9 = vmul.f32 0.11111111, %v809_v8  ;;  %v842_v47 = vmul.f32 0.11111111, %v810_v46  ;;  %v811_v48 = vld [vmem:[#allocation3 + $0xe0] sm:$0xff]  ;;  %v812_v10 = vld [vmem:[#allocation3 + $0xe8] sm:$0xff] }
  0xa4   :  { %871 = vst.msk [vmem:[%s1806_s1 + $0xc0] sm:$0xff] %vm40_vm0, %v839_v7  ;;  %872 = vst.msk [vmem:[%s1806_s1 + $0xc8] sm:$0xff] %vm40_vm0, %v840_v26  ;;  %v843_v11 = vmul.f32 0.11111111, %v811_v48  ;;  %v844_v28 = vmul.f32 0.11111111, %v812_v10 }
  0xa5   :  { %v813_v49 = vld [vmem:[#allocation3 + $0xf0] sm:$0xff]  ;;  %v814_v50 = vld [vmem:[#allocation3 + $0xf8] sm:$0xff]  ;;  %873 = vst.msk [vmem:[%s1806_s1 + $0xd0] sm:$0xff] %vm40_vm0, %v841_v9  ;;  %874 = vst.msk [vmem:[%s1806_s1 + $0xd8] sm:$0xff] %vm40_vm0, %v842_v47 }
  0xa6   :  { %v845_v17 = vmul.f32 0.11111111, %v813_v49  ;;  %v846_v19 = vmul.f32 0.11111111, %v814_v50  ;;  %875 = vst.msk [vmem:[%s1806_s1 + $0xe0] sm:$0xff] %vm40_vm0, %v843_v11  ;;  %876 = vst.msk [vmem:[%s1806_s1 + $0xe8] sm:$0xff] %vm40_vm0, %v844_v28 }
  0xa8   :  { %877 = vst.msk [vmem:[%s1806_s1 + $0xf0] sm:$0xff] %vm40_vm0, %v845_v17  ;;  %878 = vst.msk [vmem:[%s1806_s1 + $0xf8] sm:$0xff] %vm40_vm0, %v846_v19 }

</bundles_post_ra>
